<compile_context>
chip_gen: v5e
topology: v5e:2x2
jax: 0.10.0
libtpu: 0.0.40
codegen_flags: <defaults>
</compile_context>

<pallas_src>
import functools

import jax
import jax.numpy as jnp
from jax.experimental import pallas as pl
from jax.experimental.pallas import tpu as pltpu


def _round_up(n, m):
    return ((n + m - 1) // m) * m


def _tpu_generation_and_vmem():
    """Best-effort (chip generation, per-core VMEM capacity in bytes)."""
    kind = ""
    try:
        kind = jax.devices()[0].device_kind.lower()
    except Exception:
        pass
    gen = 6
    for g in (7, 6, 5, 4):
        if ("v%d" % g) in kind or ("tpu%d" % g) in kind:
            gen = g
            break
    cap = None
    try:
        cap = int(getattr(pltpu.get_tpu_info(), "vmem_capacity_bytes", 0)) or None
    except Exception:
        cap = None
    if cap is None:
        cap = (64 << 20) if gen >= 7 else (128 << 20)
    return gen, cap


def _vmem_budget_bytes(vmem_cap):
    """Usable scoped-VMEM budget, leaving headroom for Mosaic internal scratch,
    semaphores and pipeline buffers (critical on v7x's 64 MiB)."""
    if vmem_cap <= (64 << 20):          # v7x-class
        return int(vmem_cap * 0.80)     # ~51 MiB
    return int(vmem_cap * 0.85)         # ~109 MiB on v5e/v6e (128 MiB)


def _pad2(a, shape, dtype):
    dtype = jnp.dtype(dtype)
    if tuple(a.shape) == tuple(shape) and a.dtype == dtype:
        return a
    out = jnp.zeros(shape, dtype)
    return out.at[:a.shape[0], :a.shape[1]].set(a.astype(dtype))


def _topk_mask_rows(f, k):
    """Exact torch.topk(+scatter_) semantics per row of f (f >= 0, f32).

    O(k*H): each step does a row max (XLU), lowest index attaining it (XLU),
    then knocks that one occurrence out with a -inf sentinel.  The sentinel
    doubles as the selection mask (no separate boolean accumulator), and the
    lane iota stays [1, Hp] and broadcasts in the compares.
    """
    _, hp = f.shape
    lane = jax.lax.broadcasted_iota(jnp.int32, (1, hp), 1)
    neg_inf = jnp.float32(-jnp.inf)
    working = f
    for _ in range(k):                       # k is a small static constant
        m = jnp.max(working, axis=-1, keepdims=True)
        idx = jnp.min(jnp.where(working == m, lane, hp), axis=-1, keepdims=True)
        working = jnp.where(lane == idx, neg_inf, working)
    # Knocked-out positions are exactly the selected ones (f >= 0 post-ReLU).
    return jnp.where(working < 0.0, f, 0.0)


def _sae_kernel(x_ref, w_enc_ref, b_enc_ref, w_dec_ref,
                sparse_ref, recon_ref, *scratch, k, topk_chunk):
    # ---- encoder: Linear + ReLU (MXU, f32 accumulation) --------------------
    z = jnp.dot(x_ref[...], w_enc_ref[...], preferred_element_type=jnp.float32)
    f = jnp.maximum(z + b_enc_ref[...].astype(jnp.float32), 0.0)   # [TB, Hp] f32
    tb = f.shape[0]

    # ---- top-k sparsification ----------------------------------------------
    if k is None:
        sparse = f
        sparse_ref[...] = f.astype(sparse_ref.dtype)
    elif topk_chunk is None:
        sparse = _topk_mask_rows(f, k)
        sparse_ref[...] = sparse.astype(sparse_ref.dtype)
    else:
        # Row-chunked selection: keeps per-chunk state inside the vreg file
        # when TB*Hp is large; f is staged once in a f32 VMEM scratch.
        f_ref = scratch[0]
        f_ref[...] = f
        ch = topk_chunk

        def body(c, carry):
            r0 = pl.multiple_of(c * ch, ch)
            fc = f_ref[pl.ds(r0, ch), :]
            sparse_ref[pl.ds(r0, ch), :] = (
                _topk_mask_rows(fc, k).astype(sparse_ref.dtype))
            return carry

        jax.lax.fori_loop(0, tb // ch, body, 0, unroll=True)
        sparse = sparse_ref[...]

    # ---- decoder: Linear, no bias (MXU, f32 accumulation) ------------------
    recon = jnp.dot(sparse.astype(w_dec_ref.dtype), w_dec_ref[...],
                    preferred_element_type=jnp.float32)
    recon_ref[...] = recon.astype(recon_ref.dtype)


def make_topk_sae(w_enc, b_enc, w_dec, k, *, compute_dtype=None,
                  block_batch=128, topk_row_chunk=None):
    """Pads/casts the weights ONCE and returns forward(x) -> (sparse, recon).

    w_enc: [D, H]; b_enc: [H] or [1, H]; w_dec: [H, D]; k: int or None.
    """
    D, H = w_enc.shape
    assert w_dec.shape == (H, D)
    if k is not None:
        assert 0 < k <= H
    b_enc = jnp.reshape(b_enc, (1, H))

    if compute_dtype is None:
        compute_dtype = w_enc.dtype      # default keeps the module's f32 numerics
    compute_dtype = jnp.dtype(compute_dtype)
    c_bytes = compute_dtype.itemsize

    gen, vmem_cap = _tpu_generation_and_vmem()
    budget = _vmem_budget_bytes(vmem_cap)

    # MXU-geometry padding: 256-multiples on v6e/v7x (2x256x256 MXU), 128 on
    # v5e and older.  Fall back to 128 if 256-padding blows the weight budget.
    mult = 256 if gen >= 6 else 128
    Dp, Hp = _round_up(D, mult), _round_up(H, mult)
    if mult == 256 and (2 * Dp * Hp * c_bytes + Hp * 4) > budget // 2:
        Dp, Hp = _round_up(D, 128), _round_up(H, 128)

    weight_bytes = 2 * Dp * Hp * c_bytes + Hp * 4   # single-buffered residents
    # TODO(synk): if weight_bytes > budget, switch to an H-tiled streaming grid
    # instead of keeping W_enc/W_dec resident (not needed at these shapes).

    wep = _pad2(w_enc, (Dp, Hp), compute_dtype)
    bep = _pad2(b_enc, (1, Hp), jnp.float32)
    wdp = _pad2(w_dec, (Hp, Dp), compute_dtype)

    def forward(x):
        B, Dx = x.shape
        assert Dx == D
        out_dtype = x.dtype
        o_bytes = jnp.dtype(out_dtype).itemsize

        # Batch tiling: (8,128)-aligned tiles; whenever the padded batch
        # exceeds 8 rows, guarantee >= 2 tiles so both v7x TensorCores get
        # work (batch axis is "parallel"; costs nothing on v5e/v6e).
        Bp0 = _round_up(B, 8)
        if Bp0 <= 8:
            TB = Bp0
        else:
            half = _round_up((Bp0 + 1) // 2, 8)
            TB = max(8, min(int(block_batch), half))

        def act_bytes(tb):
            b = 2 * tb * Dp * c_bytes            # x tile, double-buffered
            b += 2 * tb * (Hp + Dp) * o_bytes    # sparse + recon tiles
            b += tb * Hp * 4                     # f32 top-k scratch (worst case)
            b += 4 * tb * Hp * 4                 # in-flight f32 intermediates
            return b

        while TB > 8 and weight_bytes + act_bytes(TB) > budget:
            TB = max(8, _round_up(TB // 2, 8))

        Bp = _round_up(B, TB)
        grid = (Bp // TB,)

        # Row-chunked top-k when the per-tile selection state can't live in
        # the 64-entry vreg file.
        if k is None:
            chunk = None
        elif topk_row_chunk is None:
            chunk = 8 if (TB * Hp > 32 * 1024 and TB > 8) else None
        elif topk_row_chunk and topk_row_chunk < TB:
            chunk = int(topk_row_chunk)
            if TB % chunk != 0:
                chunk = 8
        else:
            chunk = None

        xp = x.astype(compute_dtype)
        if (Bp, Dp) != (B, D):
            xp = jnp.zeros((Bp, Dp), compute_dtype).at[:B, :D].set(xp)

        scratch_shapes = ([pltpu.VMEM((TB, Hp), jnp.float32)]
                          if chunk is not None else [])

        vmem_limit = int(min(budget,
                             max(32 << 20, 2 * (weight_bytes + act_bytes(TB)))))

        cost = pl.CostEstimate(
            flops=4 * Bp * Dp * Hp,                       # encode + decode
            transcendentals=0,
            bytes_accessed=(Bp * Dp * c_bytes + 2 * Dp * Hp * c_bytes + Hp * 4
                            + Bp * (Hp + Dp) * o_bytes),
        )

        kernel = functools.partial(_sae_kernel, k=k, topk_chunk=chunk)
        resident = dict(pipeline_mode=pl.Buffered(1))     # no double-buffering
        sparse_p, recon_p = pl.pallas_call(
            kernel,
            out_shape=(
                jax.ShapeDtypeStruct((Bp, Hp), out_dtype),   # sparse_features
                jax.ShapeDtypeStruct((Bp, Dp), out_dtype),   # reconstruction
            ),
            grid_spec=pltpu.PrefetchScalarGridSpec(
                num_scalar_prefetch=0,
                grid=grid,
                in_specs=[
                    pl.BlockSpec((TB, Dp), lambda i: (i, 0)),              # x
                    pl.BlockSpec((Dp, Hp), lambda i: (0, 0), **resident),  # W_enc
                    pl.BlockSpec((1, Hp), lambda i: (0, 0), **resident),   # b_enc
                    pl.BlockSpec((Hp, Dp), lambda i: (0, 0), **resident),  # W_dec
                ],
                out_specs=[
                    pl.BlockSpec((TB, Hp), lambda i: (i, 0)),
                    pl.BlockSpec((TB, Dp), lambda i: (i, 0)),
                ],
                scratch_shapes=scratch_shapes,
            ),
            compiler_params=pltpu.CompilerParams(
                dimension_semantics=("parallel",),
                vmem_limit_bytes=vmem_limit,
            ),
            cost_estimate=cost,
        )(xp, wep, bep, wdp)

        return sparse_p[:B, :H], recon_p[:B, :D]

    return forward


def topk_sae_forward(x, w_enc, b_enc, w_dec, k, **kwargs):
    """One-shot convenience wrapper (re-pads weights every call)."""
    return make_topk_sae(w_enc, b_enc, w_dec, k, **kwargs)(x)


def _ref_forward(x, w_enc, b_enc, w_dec, k):
    """Pure-JAX reference mirroring the PyTorch forward."""
    f = jnp.maximum(x @ w_enc + jnp.reshape(b_enc, (1, -1)), 0.0)
    if k is not None:
        vals, idxs = jax.lax.top_k(f, k)
        B = f.shape[0]
        sparse = jnp.zeros_like(f).at[jnp.arange(B)[:, None], idxs].set(vals)
    else:
        sparse = f
    recon = sparse @ w_dec
    return sparse, recon


def _linear_init(key, fan_in, shape):
    bound = 1.0 / (fan_in ** 0.5)
    return jax.random.uniform(key, shape, jnp.float32, -bound, bound)


if __name__ == "__main__":
    key = jax.random.PRNGKey(0)

    # ---------------- Test 1: small f32 shapes, exact vs reference ----------
    batch, input_dim, hidden_dim, k = 8, 64, 128, 16
    kx, kw1, kb1, kw2 = jax.random.split(key, 4)
    w_enc = _linear_init(kw1, input_dim, (input_dim, hidden_dim))
    b_enc = _linear_init(kb1, input_dim, (1, hidden_dim))
    w_dec = _linear_init(kw2, hidden_dim, (hidden_dim, input_dim))
    x = jax.random.normal(kx, (batch, input_dim), jnp.float32)

    sae = make_topk_sae(w_enc, b_enc, w_dec, k)
    sparse, recon = sae(x)
    jax.block_until_ready((sparse, recon))

    ref_sparse, ref_recon = _ref_forward(x, w_enc, b_enc, w_dec, k)
    assert sparse.shape == (batch, hidden_dim)
    assert recon.shape == (batch, input_dim)
    assert jnp.allclose(sparse, ref_sparse, atol=1e-5, rtol=1e-5)
    assert jnp.allclose(recon, ref_recon, atol=1e-5, rtol=1e-5)
    assert int(jnp.max(jnp.sum(sparse != 0, axis=1))) <= k

    # ---------------- k=None path -------------------------------------------
    sp_n, rc_n = make_topk_sae(w_enc, b_enc, w_dec, None)(x)
    ref_sp_n, ref_rc_n = _ref_forward(x, w_enc, b_enc, w_dec, None)
    assert jnp.allclose(sp_n, ref_sp_n, atol=1e-5, rtol=1e-5)
    assert jnp.allclose(rc_n, ref_rc_n, atol=1e-5, rtol=1e-5)

    # ---------------- Test 2: multi-tile grid + row-chunked top-k -----------
    batch2, D2, H2, k2 = 32, 128, 512, 8
    kx2, kw21, kb21, kw22 = jax.random.split(jax.random.PRNGKey(1), 4)
    w_enc2 = _linear_init(kw21, D2, (D2, H2))
    b_enc2 = _linear_init(kb21, D2, (1, H2))
    w_dec2 = _linear_init(kw22, H2, (H2, D2))
    x2 = jax.random.normal(kx2, (batch2, D2), jnp.float32)

    sae2 = make_topk_sae(w_enc2, b_enc2, w_dec2, k2, topk_row_chunk=8)
    sp2, rc2 = sae2(x2)
    jax.block_until_ready((sp2, rc2))

    f2 = jnp.maximum(x2 @ w_enc2 + b_enc2, 0.0)
    ref_sp2, ref_rc2 = _ref_forward(x2, w_enc2, b_enc2, w_dec2, k2)
    assert sp2.shape == (batch2, H2) and rc2.shape == (batch2, D2)
    assert int(jnp.max(jnp.sum(sp2 != 0, axis=1))) <= k2
    # selected values reproduce the encoder features at those positions
    assert float(jnp.max(jnp.abs(jnp.where(sp2 != 0, sp2 - f2, 0.0)))) < 1e-4
    # reconstruction matches reference and is consistent with the sparse code
    assert jnp.allclose(rc2, ref_rc2, atol=2e-4, rtol=2e-4)
    assert jnp.allclose(rc2, sp2 @ w_dec2, atol=2e-4, rtol=2e-4)

    # ---------------- bf16 compute path (lowering sanity check) -------------
    sp3, rc3 = make_topk_sae(w_enc, b_enc, w_dec, k,
                             compute_dtype=jnp.bfloat16)(x)
    jax.block_until_ready((sp3, rc3))
    assert sp3.shape == (batch, hidden_dim) and rc3.shape == (batch, input_dim)
    assert int(jnp.max(jnp.sum(sp3 != 0, axis=1))) <= k

    print("KERNEL_OK")
</pallas_src>

<mosaic_0001>
module attributes {stable_mosaic.version = 11 : i64} {
  func.func @_sae_kernel(%arg0: i32, %arg1: memref<8x256xf32, #tpu.memory_space<vmem>>, %arg2: memref<256x256xf32, #tpu.memory_space<vmem>>, %arg3: memref<1x256xf32, #tpu.memory_space<vmem>>, %arg4: memref<256x256xf32, #tpu.memory_space<vmem>>, %arg5: memref<8x256xf32, #tpu.memory_space<vmem>>, %arg6: memref<8x256xf32, #tpu.memory_space<vmem>>) attributes {dimension_semantics = [#tpu.dimension_semantics<parallel>], iteration_bounds = array<i64: 1>, scalar_prefetch = 0 : i64, scratch_operands = 0 : i64, tpu.core_type = #tpu.core_type<tc>, window_params = [{transform_indices = @transform_0, window_bounds = array<i64: 8, 256>}, {pipeline_mode = #tpu.pipeline_mode<synchronous>, transform_indices = @transform_1, window_bounds = array<i64: 256, 256>}, {pipeline_mode = #tpu.pipeline_mode<synchronous>, transform_indices = @transform_2, window_bounds = array<i64: 1, 256>}, {pipeline_mode = #tpu.pipeline_mode<synchronous>, transform_indices = @transform_3, window_bounds = array<i64: 256, 256>}, {transform_indices = @transform_4, window_bounds = array<i64: 8, 256>}, {transform_indices = @transform_5, window_bounds = array<i64: 8, 256>}]} {
    %c0 = arith.constant 0 : index
    %c0_0 = arith.constant 0 : index
    %0 = vector.load %arg1[%c0, %c0_0] : memref<8x256xf32, #tpu.memory_space<vmem>>, vector<8x256xf32>
    %c0_1 = arith.constant 0 : index
    %c0_2 = arith.constant 0 : index
    %1 = vector.load %arg2[%c0_1, %c0_2] : memref<256x256xf32, #tpu.memory_space<vmem>>, vector<256x256xf32>
    %cst = arith.constant dense<0.000000e+00> : vector<8x256xf32>
    %2 = tpu.matmul %0, %1, %cst {dimension_numbers = #tpu.dot_dimension_numbers<[1], [0], [0], [1], [0, 0, 1, 1], [], []>} : vector<8x256xf32>, vector<256x256xf32>, vector<8x256xf32> -> vector<8x256xf32>
    %c0_3 = arith.constant 0 : index
    %c0_4 = arith.constant 0 : index
    %3 = vector.load %arg3[%c0_3, %c0_4] : memref<1x256xf32, #tpu.memory_space<vmem>>, vector<1x256xf32>
    %4 = vector.broadcast %3 : vector<1x256xf32> to vector<8x256xf32>
    %5 = arith.addf %2, %4 : vector<8x256xf32>
    %cst_5 = arith.constant 0.000000e+00 : f32
    %6 = vector.broadcast %cst_5 : f32 to vector<8x256xf32>
    %7 = arith.maximumf %5, %6 : vector<8x256xf32>
    %8 = tpu.iota {dimensions = array<i32: 1>} : vector<1x256xi32>
    %cst_6 = arith.constant dense<0xFF800000> : vector<8xf32>
    %9 = vector.multi_reduction <maximumf>, %7, %cst_6 [1] : vector<8x256xf32> to vector<8xf32>
    %10 = vector.shape_cast %9 : vector<8xf32> to vector<8x1xf32>
    %11 = vector.broadcast %10 : vector<8x1xf32> to vector<8x256xf32>
    %12 = arith.cmpf oeq, %7, %11 : vector<8x256xf32>
    %c256_i32 = arith.constant 256 : i32
    %13 = vector.shape_cast %8 : vector<1x256xi32> to vector<1x256xi32>
    %14 = vector.broadcast %13 : vector<1x256xi32> to vector<8x256xi32>
    %15 = vector.broadcast %c256_i32 : i32 to vector<8x256xi32>
    %16 = arith.select %12, %14, %15 : vector<8x256xi1>, vector<8x256xi32>
    %cst_7 = arith.constant dense<2147483647> : vector<8xi32>
    %17 = vector.multi_reduction <minsi>, %16, %cst_7 [1] : vector<8x256xi32> to vector<8xi32>
    %18 = vector.shape_cast %17 : vector<8xi32> to vector<8x1xi32>
    %19 = vector.broadcast %8 : vector<1x256xi32> to vector<8x256xi32>
    %20 = vector.broadcast %18 : vector<8x1xi32> to vector<8x256xi32>
    %21 = arith.cmpi eq, %19, %20 : vector<8x256xi32>
    %cst_8 = arith.constant 0xFF800000 : f32
    %22 = vector.broadcast %cst_8 : f32 to vector<8x256xf32>
    %23 = arith.select %21, %22, %7 : vector<8x256xi1>, vector<8x256xf32>
    %cst_9 = arith.constant dense<0xFF800000> : vector<8xf32>
    %24 = vector.multi_reduction <maximumf>, %23, %cst_9 [1] : vector<8x256xf32> to vector<8xf32>
    %25 = vector.shape_cast %24 : vector<8xf32> to vector<8x1xf32>
    %26 = vector.broadcast %25 : vector<8x1xf32> to vector<8x256xf32>
    %27 = arith.cmpf oeq, %23, %26 : vector<8x256xf32>
    %c256_i32_10 = arith.constant 256 : i32
    %28 = vector.shape_cast %8 : vector<1x256xi32> to vector<1x256xi32>
    %29 = vector.broadcast %28 : vector<1x256xi32> to vector<8x256xi32>
    %30 = vector.broadcast %c256_i32_10 : i32 to vector<8x256xi32>
    %31 = arith.select %27, %29, %30 : vector<8x256xi1>, vector<8x256xi32>
    %cst_11 = arith.constant dense<2147483647> : vector<8xi32>
    %32 = vector.multi_reduction <minsi>, %31, %cst_11 [1] : vector<8x256xi32> to vector<8xi32>
    %33 = vector.shape_cast %32 : vector<8xi32> to vector<8x1xi32>
    %34 = vector.broadcast %8 : vector<1x256xi32> to vector<8x256xi32>
    %35 = vector.broadcast %33 : vector<8x1xi32> to vector<8x256xi32>
    %36 = arith.cmpi eq, %34, %35 : vector<8x256xi32>
    %cst_12 = arith.constant 0xFF800000 : f32
    %37 = vector.broadcast %cst_12 : f32 to vector<8x256xf32>
    %38 = arith.select %36, %37, %23 : vector<8x256xi1>, vector<8x256xf32>
    %cst_13 = arith.constant dense<0xFF800000> : vector<8xf32>
    %39 = vector.multi_reduction <maximumf>, %38, %cst_13 [1] : vector<8x256xf32> to vector<8xf32>
    %40 = vector.shape_cast %39 : vector<8xf32> to vector<8x1xf32>
    %41 = vector.broadcast %40 : vector<8x1xf32> to vector<8x256xf32>
    %42 = arith.cmpf oeq, %38, %41 : vector<8x256xf32>
    %c256_i32_14 = arith.constant 256 : i32
    %43 = vector.shape_cast %8 : vector<1x256xi32> to vector<1x256xi32>
    %44 = vector.broadcast %43 : vector<1x256xi32> to vector<8x256xi32>
    %45 = vector.broadcast %c256_i32_14 : i32 to vector<8x256xi32>
    %46 = arith.select %42, %44, %45 : vector<8x256xi1>, vector<8x256xi32>
    %cst_15 = arith.constant dense<2147483647> : vector<8xi32>
    %47 = vector.multi_reduction <minsi>, %46, %cst_15 [1] : vector<8x256xi32> to vector<8xi32>
    %48 = vector.shape_cast %47 : vector<8xi32> to vector<8x1xi32>
    %49 = vector.broadcast %8 : vector<1x256xi32> to vector<8x256xi32>
    %50 = vector.broadcast %48 : vector<8x1xi32> to vector<8x256xi32>
    %51 = arith.cmpi eq, %49, %50 : vector<8x256xi32>
    %cst_16 = arith.constant 0xFF800000 : f32
    %52 = vector.broadcast %cst_16 : f32 to vector<8x256xf32>
    %53 = arith.select %51, %52, %38 : vector<8x256xi1>, vector<8x256xf32>
    %cst_17 = arith.constant dense<0xFF800000> : vector<8xf32>
    %54 = vector.multi_reduction <maximumf>, %53, %cst_17 [1] : vector<8x256xf32> to vector<8xf32>
    %55 = vector.shape_cast %54 : vector<8xf32> to vector<8x1xf32>
    %56 = vector.broadcast %55 : vector<8x1xf32> to vector<8x256xf32>
    %57 = arith.cmpf oeq, %53, %56 : vector<8x256xf32>
    %c256_i32_18 = arith.constant 256 : i32
    %58 = vector.shape_cast %8 : vector<1x256xi32> to vector<1x256xi32>
    %59 = vector.broadcast %58 : vector<1x256xi32> to vector<8x256xi32>
    %60 = vector.broadcast %c256_i32_18 : i32 to vector<8x256xi32>
    %61 = arith.select %57, %59, %60 : vector<8x256xi1>, vector<8x256xi32>
    %cst_19 = arith.constant dense<2147483647> : vector<8xi32>
    %62 = vector.multi_reduction <minsi>, %61, %cst_19 [1] : vector<8x256xi32> to vector<8xi32>
    %63 = vector.shape_cast %62 : vector<8xi32> to vector<8x1xi32>
    %64 = vector.broadcast %8 : vector<1x256xi32> to vector<8x256xi32>
    %65 = vector.broadcast %63 : vector<8x1xi32> to vector<8x256xi32>
    %66 = arith.cmpi eq, %64, %65 : vector<8x256xi32>
    %cst_20 = arith.constant 0xFF800000 : f32
    %67 = vector.broadcast %cst_20 : f32 to vector<8x256xf32>
    %68 = arith.select %66, %67, %53 : vector<8x256xi1>, vector<8x256xf32>
    %cst_21 = arith.constant dense<0xFF800000> : vector<8xf32>
    %69 = vector.multi_reduction <maximumf>, %68, %cst_21 [1] : vector<8x256xf32> to vector<8xf32>
    %70 = vector.shape_cast %69 : vector<8xf32> to vector<8x1xf32>
    %71 = vector.broadcast %70 : vector<8x1xf32> to vector<8x256xf32>
    %72 = arith.cmpf oeq, %68, %71 : vector<8x256xf32>
    %c256_i32_22 = arith.constant 256 : i32
    %73 = vector.shape_cast %8 : vector<1x256xi32> to vector<1x256xi32>
    %74 = vector.broadcast %73 : vector<1x256xi32> to vector<8x256xi32>
    %75 = vector.broadcast %c256_i32_22 : i32 to vector<8x256xi32>
    %76 = arith.select %72, %74, %75 : vector<8x256xi1>, vector<8x256xi32>
    %cst_23 = arith.constant dense<2147483647> : vector<8xi32>
    %77 = vector.multi_reduction <minsi>, %76, %cst_23 [1] : vector<8x256xi32> to vector<8xi32>
    %78 = vector.shape_cast %77 : vector<8xi32> to vector<8x1xi32>
    %79 = vector.broadcast %8 : vector<1x256xi32> to vector<8x256xi32>
    %80 = vector.broadcast %78 : vector<8x1xi32> to vector<8x256xi32>
    %81 = arith.cmpi eq, %79, %80 : vector<8x256xi32>
    %cst_24 = arith.constant 0xFF800000 : f32
    %82 = vector.broadcast %cst_24 : f32 to vector<8x256xf32>
    %83 = arith.select %81, %82, %68 : vector<8x256xi1>, vector<8x256xf32>
    %cst_25 = arith.constant dense<0xFF800000> : vector<8xf32>
    %84 = vector.multi_reduction <maximumf>, %83, %cst_25 [1] : vector<8x256xf32> to vector<8xf32>
    %85 = vector.shape_cast %84 : vector<8xf32> to vector<8x1xf32>
    %86 = vector.broadcast %85 : vector<8x1xf32> to vector<8x256xf32>
    %87 = arith.cmpf oeq, %83, %86 : vector<8x256xf32>
    %c256_i32_26 = arith.constant 256 : i32
    %88 = vector.shape_cast %8 : vector<1x256xi32> to vector<1x256xi32>
    %89 = vector.broadcast %88 : vector<1x256xi32> to vector<8x256xi32>
    %90 = vector.broadcast %c256_i32_26 : i32 to vector<8x256xi32>
    %91 = arith.select %87, %89, %90 : vector<8x256xi1>, vector<8x256xi32>
    %cst_27 = arith.constant dense<2147483647> : vector<8xi32>
    %92 = vector.multi_reduction <minsi>, %91, %cst_27 [1] : vector<8x256xi32> to vector<8xi32>
    %93 = vector.shape_cast %92 : vector<8xi32> to vector<8x1xi32>
    %94 = vector.broadcast %8 : vector<1x256xi32> to vector<8x256xi32>
    %95 = vector.broadcast %93 : vector<8x1xi32> to vector<8x256xi32>
    %96 = arith.cmpi eq, %94, %95 : vector<8x256xi32>
    %cst_28 = arith.constant 0xFF800000 : f32
    %97 = vector.broadcast %cst_28 : f32 to vector<8x256xf32>
    %98 = arith.select %96, %97, %83 : vector<8x256xi1>, vector<8x256xf32>
    %cst_29 = arith.constant dense<0xFF800000> : vector<8xf32>
    %99 = vector.multi_reduction <maximumf>, %98, %cst_29 [1] : vector<8x256xf32> to vector<8xf32>
    %100 = vector.shape_cast %99 : vector<8xf32> to vector<8x1xf32>
    %101 = vector.broadcast %100 : vector<8x1xf32> to vector<8x256xf32>
    %102 = arith.cmpf oeq, %98, %101 : vector<8x256xf32>
    %c256_i32_30 = arith.constant 256 : i32
    %103 = vector.shape_cast %8 : vector<1x256xi32> to vector<1x256xi32>
    %104 = vector.broadcast %103 : vector<1x256xi32> to vector<8x256xi32>
    %105 = vector.broadcast %c256_i32_30 : i32 to vector<8x256xi32>
    %106 = arith.select %102, %104, %105 : vector<8x256xi1>, vector<8x256xi32>
    %cst_31 = arith.constant dense<2147483647> : vector<8xi32>
    %107 = vector.multi_reduction <minsi>, %106, %cst_31 [1] : vector<8x256xi32> to vector<8xi32>
    %108 = vector.shape_cast %107 : vector<8xi32> to vector<8x1xi32>
    %109 = vector.broadcast %8 : vector<1x256xi32> to vector<8x256xi32>
    %110 = vector.broadcast %108 : vector<8x1xi32> to vector<8x256xi32>
    %111 = arith.cmpi eq, %109, %110 : vector<8x256xi32>
    %cst_32 = arith.constant 0xFF800000 : f32
    %112 = vector.broadcast %cst_32 : f32 to vector<8x256xf32>
    %113 = arith.select %111, %112, %98 : vector<8x256xi1>, vector<8x256xf32>
    %cst_33 = arith.constant dense<0xFF800000> : vector<8xf32>
    %114 = vector.multi_reduction <maximumf>, %113, %cst_33 [1] : vector<8x256xf32> to vector<8xf32>
    %115 = vector.shape_cast %114 : vector<8xf32> to vector<8x1xf32>
    %116 = vector.broadcast %115 : vector<8x1xf32> to vector<8x256xf32>
    %117 = arith.cmpf oeq, %113, %116 : vector<8x256xf32>
    %c256_i32_34 = arith.constant 256 : i32
    %118 = vector.shape_cast %8 : vector<1x256xi32> to vector<1x256xi32>
    %119 = vector.broadcast %118 : vector<1x256xi32> to vector<8x256xi32>
    %120 = vector.broadcast %c256_i32_34 : i32 to vector<8x256xi32>
    %121 = arith.select %117, %119, %120 : vector<8x256xi1>, vector<8x256xi32>
    %cst_35 = arith.constant dense<2147483647> : vector<8xi32>
    %122 = vector.multi_reduction <minsi>, %121, %cst_35 [1] : vector<8x256xi32> to vector<8xi32>
    %123 = vector.shape_cast %122 : vector<8xi32> to vector<8x1xi32>
    %124 = vector.broadcast %8 : vector<1x256xi32> to vector<8x256xi32>
    %125 = vector.broadcast %123 : vector<8x1xi32> to vector<8x256xi32>
    %126 = arith.cmpi eq, %124, %125 : vector<8x256xi32>
    %cst_36 = arith.constant 0xFF800000 : f32
    %127 = vector.broadcast %cst_36 : f32 to vector<8x256xf32>
    %128 = arith.select %126, %127, %113 : vector<8x256xi1>, vector<8x256xf32>
    %cst_37 = arith.constant dense<0xFF800000> : vector<8xf32>
    %129 = vector.multi_reduction <maximumf>, %128, %cst_37 [1] : vector<8x256xf32> to vector<8xf32>
    %130 = vector.shape_cast %129 : vector<8xf32> to vector<8x1xf32>
    %131 = vector.broadcast %130 : vector<8x1xf32> to vector<8x256xf32>
    %132 = arith.cmpf oeq, %128, %131 : vector<8x256xf32>
    %c256_i32_38 = arith.constant 256 : i32
    %133 = vector.shape_cast %8 : vector<1x256xi32> to vector<1x256xi32>
    %134 = vector.broadcast %133 : vector<1x256xi32> to vector<8x256xi32>
    %135 = vector.broadcast %c256_i32_38 : i32 to vector<8x256xi32>
    %136 = arith.select %132, %134, %135 : vector<8x256xi1>, vector<8x256xi32>
    %cst_39 = arith.constant dense<2147483647> : vector<8xi32>
    %137 = vector.multi_reduction <minsi>, %136, %cst_39 [1] : vector<8x256xi32> to vector<8xi32>
    %138 = vector.shape_cast %137 : vector<8xi32> to vector<8x1xi32>
    %139 = vector.broadcast %8 : vector<1x256xi32> to vector<8x256xi32>
    %140 = vector.broadcast %138 : vector<8x1xi32> to vector<8x256xi32>
    %141 = arith.cmpi eq, %139, %140 : vector<8x256xi32>
    %cst_40 = arith.constant 0xFF800000 : f32
    %142 = vector.broadcast %cst_40 : f32 to vector<8x256xf32>
    %143 = arith.select %141, %142, %128 : vector<8x256xi1>, vector<8x256xf32>
    %cst_41 = arith.constant dense<0xFF800000> : vector<8xf32>
    %144 = vector.multi_reduction <maximumf>, %143, %cst_41 [1] : vector<8x256xf32> to vector<8xf32>
    %145 = vector.shape_cast %144 : vector<8xf32> to vector<8x1xf32>
    %146 = vector.broadcast %145 : vector<8x1xf32> to vector<8x256xf32>
    %147 = arith.cmpf oeq, %143, %146 : vector<8x256xf32>
    %c256_i32_42 = arith.constant 256 : i32
    %148 = vector.shape_cast %8 : vector<1x256xi32> to vector<1x256xi32>
    %149 = vector.broadcast %148 : vector<1x256xi32> to vector<8x256xi32>
    %150 = vector.broadcast %c256_i32_42 : i32 to vector<8x256xi32>
    %151 = arith.select %147, %149, %150 : vector<8x256xi1>, vector<8x256xi32>
    %cst_43 = arith.constant dense<2147483647> : vector<8xi32>
    %152 = vector.multi_reduction <minsi>, %151, %cst_43 [1] : vector<8x256xi32> to vector<8xi32>
    %153 = vector.shape_cast %152 : vector<8xi32> to vector<8x1xi32>
    %154 = vector.broadcast %8 : vector<1x256xi32> to vector<8x256xi32>
    %155 = vector.broadcast %153 : vector<8x1xi32> to vector<8x256xi32>
    %156 = arith.cmpi eq, %154, %155 : vector<8x256xi32>
    %cst_44 = arith.constant 0xFF800000 : f32
    %157 = vector.broadcast %cst_44 : f32 to vector<8x256xf32>
    %158 = arith.select %156, %157, %143 : vector<8x256xi1>, vector<8x256xf32>
    %cst_45 = arith.constant dense<0xFF800000> : vector<8xf32>
    %159 = vector.multi_reduction <maximumf>, %158, %cst_45 [1] : vector<8x256xf32> to vector<8xf32>
    %160 = vector.shape_cast %159 : vector<8xf32> to vector<8x1xf32>
    %161 = vector.broadcast %160 : vector<8x1xf32> to vector<8x256xf32>
    %162 = arith.cmpf oeq, %158, %161 : vector<8x256xf32>
    %c256_i32_46 = arith.constant 256 : i32
    %163 = vector.shape_cast %8 : vector<1x256xi32> to vector<1x256xi32>
    %164 = vector.broadcast %163 : vector<1x256xi32> to vector<8x256xi32>
    %165 = vector.broadcast %c256_i32_46 : i32 to vector<8x256xi32>
    %166 = arith.select %162, %164, %165 : vector<8x256xi1>, vector<8x256xi32>
    %cst_47 = arith.constant dense<2147483647> : vector<8xi32>
    %167 = vector.multi_reduction <minsi>, %166, %cst_47 [1] : vector<8x256xi32> to vector<8xi32>
    %168 = vector.shape_cast %167 : vector<8xi32> to vector<8x1xi32>
    %169 = vector.broadcast %8 : vector<1x256xi32> to vector<8x256xi32>
    %170 = vector.broadcast %168 : vector<8x1xi32> to vector<8x256xi32>
    %171 = arith.cmpi eq, %169, %170 : vector<8x256xi32>
    %cst_48 = arith.constant 0xFF800000 : f32
    %172 = vector.broadcast %cst_48 : f32 to vector<8x256xf32>
    %173 = arith.select %171, %172, %158 : vector<8x256xi1>, vector<8x256xf32>
    %cst_49 = arith.constant dense<0xFF800000> : vector<8xf32>
    %174 = vector.multi_reduction <maximumf>, %173, %cst_49 [1] : vector<8x256xf32> to vector<8xf32>
    %175 = vector.shape_cast %174 : vector<8xf32> to vector<8x1xf32>
    %176 = vector.broadcast %175 : vector<8x1xf32> to vector<8x256xf32>
    %177 = arith.cmpf oeq, %173, %176 : vector<8x256xf32>
    %c256_i32_50 = arith.constant 256 : i32
    %178 = vector.shape_cast %8 : vector<1x256xi32> to vector<1x256xi32>
    %179 = vector.broadcast %178 : vector<1x256xi32> to vector<8x256xi32>
    %180 = vector.broadcast %c256_i32_50 : i32 to vector<8x256xi32>
    %181 = arith.select %177, %179, %180 : vector<8x256xi1>, vector<8x256xi32>
    %cst_51 = arith.constant dense<2147483647> : vector<8xi32>
    %182 = vector.multi_reduction <minsi>, %181, %cst_51 [1] : vector<8x256xi32> to vector<8xi32>
    %183 = vector.shape_cast %182 : vector<8xi32> to vector<8x1xi32>
    %184 = vector.broadcast %8 : vector<1x256xi32> to vector<8x256xi32>
    %185 = vector.broadcast %183 : vector<8x1xi32> to vector<8x256xi32>
    %186 = arith.cmpi eq, %184, %185 : vector<8x256xi32>
    %cst_52 = arith.constant 0xFF800000 : f32
    %187 = vector.broadcast %cst_52 : f32 to vector<8x256xf32>
    %188 = arith.select %186, %187, %173 : vector<8x256xi1>, vector<8x256xf32>
    %cst_53 = arith.constant dense<0xFF800000> : vector<8xf32>
    %189 = vector.multi_reduction <maximumf>, %188, %cst_53 [1] : vector<8x256xf32> to vector<8xf32>
    %190 = vector.shape_cast %189 : vector<8xf32> to vector<8x1xf32>
    %191 = vector.broadcast %190 : vector<8x1xf32> to vector<8x256xf32>
    %192 = arith.cmpf oeq, %188, %191 : vector<8x256xf32>
    %c256_i32_54 = arith.constant 256 : i32
    %193 = vector.shape_cast %8 : vector<1x256xi32> to vector<1x256xi32>
    %194 = vector.broadcast %193 : vector<1x256xi32> to vector<8x256xi32>
    %195 = vector.broadcast %c256_i32_54 : i32 to vector<8x256xi32>
    %196 = arith.select %192, %194, %195 : vector<8x256xi1>, vector<8x256xi32>
    %cst_55 = arith.constant dense<2147483647> : vector<8xi32>
    %197 = vector.multi_reduction <minsi>, %196, %cst_55 [1] : vector<8x256xi32> to vector<8xi32>
    %198 = vector.shape_cast %197 : vector<8xi32> to vector<8x1xi32>
    %199 = vector.broadcast %8 : vector<1x256xi32> to vector<8x256xi32>
    %200 = vector.broadcast %198 : vector<8x1xi32> to vector<8x256xi32>
    %201 = arith.cmpi eq, %199, %200 : vector<8x256xi32>
    %cst_56 = arith.constant 0xFF800000 : f32
    %202 = vector.broadcast %cst_56 : f32 to vector<8x256xf32>
    %203 = arith.select %201, %202, %188 : vector<8x256xi1>, vector<8x256xf32>
    %cst_57 = arith.constant dense<0xFF800000> : vector<8xf32>
    %204 = vector.multi_reduction <maximumf>, %203, %cst_57 [1] : vector<8x256xf32> to vector<8xf32>
    %205 = vector.shape_cast %204 : vector<8xf32> to vector<8x1xf32>
    %206 = vector.broadcast %205 : vector<8x1xf32> to vector<8x256xf32>
    %207 = arith.cmpf oeq, %203, %206 : vector<8x256xf32>
    %c256_i32_58 = arith.constant 256 : i32
    %208 = vector.shape_cast %8 : vector<1x256xi32> to vector<1x256xi32>
    %209 = vector.broadcast %208 : vector<1x256xi32> to vector<8x256xi32>
    %210 = vector.broadcast %c256_i32_58 : i32 to vector<8x256xi32>
    %211 = arith.select %207, %209, %210 : vector<8x256xi1>, vector<8x256xi32>
    %cst_59 = arith.constant dense<2147483647> : vector<8xi32>
    %212 = vector.multi_reduction <minsi>, %211, %cst_59 [1] : vector<8x256xi32> to vector<8xi32>
    %213 = vector.shape_cast %212 : vector<8xi32> to vector<8x1xi32>
    %214 = vector.broadcast %8 : vector<1x256xi32> to vector<8x256xi32>
    %215 = vector.broadcast %213 : vector<8x1xi32> to vector<8x256xi32>
    %216 = arith.cmpi eq, %214, %215 : vector<8x256xi32>
    %cst_60 = arith.constant 0xFF800000 : f32
    %217 = vector.broadcast %cst_60 : f32 to vector<8x256xf32>
    %218 = arith.select %216, %217, %203 : vector<8x256xi1>, vector<8x256xf32>
    %cst_61 = arith.constant dense<0xFF800000> : vector<8xf32>
    %219 = vector.multi_reduction <maximumf>, %218, %cst_61 [1] : vector<8x256xf32> to vector<8xf32>
    %220 = vector.shape_cast %219 : vector<8xf32> to vector<8x1xf32>
    %221 = vector.broadcast %220 : vector<8x1xf32> to vector<8x256xf32>
    %222 = arith.cmpf oeq, %218, %221 : vector<8x256xf32>
    %c256_i32_62 = arith.constant 256 : i32
    %223 = vector.shape_cast %8 : vector<1x256xi32> to vector<1x256xi32>
    %224 = vector.broadcast %223 : vector<1x256xi32> to vector<8x256xi32>
    %225 = vector.broadcast %c256_i32_62 : i32 to vector<8x256xi32>
    %226 = arith.select %222, %224, %225 : vector<8x256xi1>, vector<8x256xi32>
    %cst_63 = arith.constant dense<2147483647> : vector<8xi32>
    %227 = vector.multi_reduction <minsi>, %226, %cst_63 [1] : vector<8x256xi32> to vector<8xi32>
    %228 = vector.shape_cast %227 : vector<8xi32> to vector<8x1xi32>
    %229 = vector.broadcast %8 : vector<1x256xi32> to vector<8x256xi32>
    %230 = vector.broadcast %228 : vector<8x1xi32> to vector<8x256xi32>
    %231 = arith.cmpi eq, %229, %230 : vector<8x256xi32>
    %cst_64 = arith.constant 0xFF800000 : f32
    %232 = vector.broadcast %cst_64 : f32 to vector<8x256xf32>
    %233 = arith.select %231, %232, %218 : vector<8x256xi1>, vector<8x256xf32>
    %cst_65 = arith.constant dense<0xFF800000> : vector<8xf32>
    %234 = vector.multi_reduction <maximumf>, %233, %cst_65 [1] : vector<8x256xf32> to vector<8xf32>
    %235 = vector.shape_cast %234 : vector<8xf32> to vector<8x1xf32>
    %236 = vector.broadcast %235 : vector<8x1xf32> to vector<8x256xf32>
    %237 = arith.cmpf oeq, %233, %236 : vector<8x256xf32>
    %c256_i32_66 = arith.constant 256 : i32
    %238 = vector.shape_cast %8 : vector<1x256xi32> to vector<1x256xi32>
    %239 = vector.broadcast %238 : vector<1x256xi32> to vector<8x256xi32>
    %240 = vector.broadcast %c256_i32_66 : i32 to vector<8x256xi32>
    %241 = arith.select %237, %239, %240 : vector<8x256xi1>, vector<8x256xi32>
    %cst_67 = arith.constant dense<2147483647> : vector<8xi32>
    %242 = vector.multi_reduction <minsi>, %241, %cst_67 [1] : vector<8x256xi32> to vector<8xi32>
    %243 = vector.shape_cast %242 : vector<8xi32> to vector<8x1xi32>
    %244 = vector.broadcast %8 : vector<1x256xi32> to vector<8x256xi32>
    %245 = vector.broadcast %243 : vector<8x1xi32> to vector<8x256xi32>
    %246 = arith.cmpi eq, %244, %245 : vector<8x256xi32>
    %cst_68 = arith.constant 0xFF800000 : f32
    %247 = vector.broadcast %cst_68 : f32 to vector<8x256xf32>
    %248 = arith.select %246, %247, %233 : vector<8x256xi1>, vector<8x256xf32>
    %cst_69 = arith.constant 0.000000e+00 : f32
    %249 = vector.broadcast %cst_69 : f32 to vector<8x256xf32>
    %250 = arith.cmpf olt, %248, %249 : vector<8x256xf32>
    %cst_70 = arith.constant 0.000000e+00 : f32
    %251 = vector.broadcast %cst_70 : f32 to vector<8x256xf32>
    %252 = arith.select %250, %7, %251 : vector<8x256xi1>, vector<8x256xf32>
    %c0_71 = arith.constant 0 : index
    %c0_72 = arith.constant 0 : index
    %253 = vector.load %arg5[%c0_71, %c0_72] : memref<8x256xf32, #tpu.memory_space<vmem>>, vector<8x256xf32>
    tpu.vector_store %arg5[%c0_71, %c0_72], %252 {strides = array<i32>} : memref<8x256xf32, #tpu.memory_space<vmem>>, vector<8x256xf32>,
    %c0_73 = arith.constant 0 : index
    %c0_74 = arith.constant 0 : index
    %254 = vector.load %arg4[%c0_73, %c0_74] : memref<256x256xf32, #tpu.memory_space<vmem>>, vector<256x256xf32>
    %cst_75 = arith.constant dense<0.000000e+00> : vector<8x256xf32>
    %255 = tpu.matmul %252, %254, %cst_75 {dimension_numbers = #tpu.dot_dimension_numbers<[1], [0], [0], [1], [0, 0, 1, 1], [], []>} : vector<8x256xf32>, vector<256x256xf32>, vector<8x256xf32> -> vector<8x256xf32>
    %c0_76 = arith.constant 0 : index
    %c0_77 = arith.constant 0 : index
    %256 = vector.load %arg6[%c0_76, %c0_77] : memref<8x256xf32, #tpu.memory_space<vmem>>, vector<8x256xf32>
    tpu.vector_store %arg6[%c0_76, %c0_77], %255 {strides = array<i32>} : memref<8x256xf32, #tpu.memory_space<vmem>>, vector<8x256xf32>,
    return
  }
  func.func @transform_0(%arg0: i32) -> (i32, i32) {
    %c0_i32 = arith.constant 0 : i32
    %c0_i32_0 = arith.constant 0 : i32
    return %arg0, %c0_i32 : i32, i32
  }
  func.func @transform_1(%arg0: i32) -> (i32, i32) {
    %c0_i32 = arith.constant 0 : i32
    %c0_i32_0 = arith.constant 0 : i32
    %c0_i32_1 = arith.constant 0 : i32
    return %c0_i32, %c0_i32_0 : i32, i32
  }
  func.func @transform_2(%arg0: i32) -> (i32, i32) {
    %c0_i32 = arith.constant 0 : i32
    %c0_i32_0 = arith.constant 0 : i32
    %c0_i32_1 = arith.constant 0 : i32
    return %c0_i32, %c0_i32_0 : i32, i32
  }
  func.func @transform_3(%arg0: i32) -> (i32, i32) {
    %c0_i32 = arith.constant 0 : i32
    %c0_i32_0 = arith.constant 0 : i32
    %c0_i32_1 = arith.constant 0 : i32
    return %c0_i32, %c0_i32_0 : i32, i32
  }
  func.func @transform_4(%arg0: i32) -> (i32, i32) {
    %c0_i32 = arith.constant 0 : i32
    %c0_i32_0 = arith.constant 0 : i32
    return %arg0, %c0_i32 : i32, i32
  }
  func.func @transform_5(%arg0: i32) -> (i32, i32) {
    %c0_i32 = arith.constant 0 : i32
    %c0_i32_0 = arith.constant 0 : i32
    return %arg0, %c0_i32 : i32, i32
  }
}

</mosaic_0001>

<bundles_post_ra>
// kernel: tpu_custom_call.1
= control target key start
LH: loop header
LB: loop body
LE: loop exit
PB: predicated region body
PF: predicated region fallthrough
CT: control target
= control target key end

     0   :  { %11 = vsyncpa [#allocation3], 0  ;;  %s1181_s0 = inlined_call_operand.hbm [shape: f32[8,256], index: 0, kind: input, shape index: {}]   ;;  %s1182_s1 = inlined_call_operand.hbm [shape: f32[256,256], index: 1, kind: input, shape index: {}]   ;;  %s1183_s2 = inlined_call_operand.hbm [shape: f32[1,256], index: 2, kind: input, shape index: {}]   ;;  %s1184_s3 = inlined_call_operand.hbm [shape: f32[256,256], index: 3, kind: input, shape index: {}]   ;;  %s1185_s4 = inlined_call_operand.hbm [shape: f32[8,256], index: 4, kind: output, shape index: {0}]   ;;  %s1186_s5 = inlined_call_operand.hbm [shape: f32[8,256], index: 5, kind: output, shape index: {1}]  }
   0x1   :  { %12 = vsyncpa [#allocation6], 0 }
   0x2   :  { %13 = vsyncpa [#allocation9], 0 }
   0x3   :  { %14 = vsyncpa [#allocation4], 0  ;;  %s31_s20 = sshll.u32 %s1182_s1, 4  ;;  %s32_s20 = int_to_ptr.hbm [resolvable:$true] %s31_s20 }
   0x4   :  { %15 = vsyncpa [#allocation12], 0  ;;  %s1022_s21 = smov [#allocation5]   ;;  %s21_s25 = sshll.u32 %s1181_s0, 4  ;;  %s22_s25 = int_to_ptr.hbm [resolvable:$true] %s21_s25 }
   0x5   :  { %s33_s22 = sshll.u32 %s1022_s21, 4  ;;  %s1023_s26 = smov 256   ;;  %s34_s22 = int_to_ptr.vmem [resolvable:$true] %s33_s22 }
   0x6   :  { %s1024_s27 = smov 16   ;;  %s1025_s28 = smov [#allocation2]  }
   0x7   :  { %39 = dma.hbm_to_vmem [thread:$0]  %s32_s20, 8192, %s34_s22, [#allocation6], %s1023_s26, %s1023_s26, %s1024_s27  }
   0x8   :  { %s23_s29 = sshll.u32 %s1025_s28, 4  ;;  %s45_s7 = sshll.u32 %s1183_s2, 4  ;;  %s24_s29 = int_to_ptr.vmem [resolvable:$true] %s23_s29  ;;  %s46_s7 = int_to_ptr.hbm [resolvable:$true] %s45_s7 }
   0x9   :  { %26 = dma.hbm_to_vmem [thread:$0]  %s22_s25, 256, %s24_s29, [#allocation3]  }
   0xa   :  { %s55_s9 = sshll.u32 %s1184_s3, 4  ;;  %s1026_s10 = smov [#allocation7]   ;;  %s56_s9 = int_to_ptr.hbm [resolvable:$true] %s55_s9 }
   0xb   :  { %s47_s11 = sshll.u32 %s1026_s10, 4  ;;  %s1027_s0 = smov [#allocation8]   ;;  %s48_s11 = int_to_ptr.vmem [resolvable:$true] %s47_s11 }
   0xc   :  { %50 = dma.hbm_to_vmem [thread:$0]  %s46_s7, 32, %s48_s11, [#allocation6]  }
   0xd   :  { %s57_s12 = sshll.u32 %s1027_s0, 4  ;;  %s58_s12 = int_to_ptr.vmem [resolvable:$true] %s57_s12 }
   0xe   :  { %63 = dma.hbm_to_vmem [thread:$0]  %s56_s9, 8192, %s58_s12, [#allocation9], %s1023_s26, %s1023_s26, %s1024_s27  }
   0xf   :  { %1012 = dma.done.wait [#allocation3], 256  }
  0x10   :  { %1013 = vsyncadd [#allocation3], 4294967040 }
  0x11   :  { %1014 = dma.done.wait [#allocation6], 8224  }
  0x12   :  { %1015 = vsyncadd [#allocation6], 4294959072 }
  0x13   :  { %1016 = dma.done.wait [#allocation9], 8192  }
  0x14   :  { %1017 = vsyncadd [#allocation9], 4294959104  ;;  %v113_v0 = vld [vmem:[#allocation5 + $0xf8] sm:$0xff]  ;;  %v111_v1 = vld [vmem:[#allocation5 + $0xe8] sm:$0xff]  ;;  %s1028_s2 = smov [#allocation10]   ;;  %s828_s15 = sshll.u32 %s1185_s4, 4  ;;  %s829_s15 = int_to_ptr.hbm [resolvable:$true] %s828_s15 }
  0x15   :  { %v145_v2 = vld [vmem:[#allocation5 + $0x1f8] sm:$0xff]  ;;  %192 = vmatpush.msra.mxu2 %v113_v0  ;;  %v143_v3 = vld [vmem:[#allocation5 + $0x1e8] sm:$0xff]  ;;  %v112_v4 = vld [vmem:[#allocation5 + $0xf0] sm:$0xff]  ;;  %s826_s3 = sshll.u32 %s1028_s2, 4  ;;  %s1029_s16 = smov [#allocation11]   ;;  %s827_s3 = int_to_ptr.vmem [resolvable:$true] %s826_s3 }
  0x16   :  { %212 = vmatpush.msra.mxu3 %v145_v2  ;;  %v109_v5 = vld [vmem:[#allocation5 + $0xd8] sm:$0xff]  ;;  %152 = vmatpush.msra.mxu0 %v112_v4  ;;  %v110_v7 = vld [vmem:[#allocation5 + $0xe0] sm:$0xff]  ;;  %v107_v8 = vld [vmem:[#allocation5 + $0xc8] sm:$0xff]  ;;  %s837_s17 = sshll.u32 %s1029_s16, 4  ;;  %s839_s20 = sshll.u32 %s1186_s5, 4  ;;  %s838_s17 = int_to_ptr.vmem [resolvable:$true] %s837_s17  ;;  %s840_s20 = int_to_ptr.hbm [resolvable:$true] %s839_s20 }
  0x17   :  { %v141_v6 = vld [vmem:[#allocation5 + $0x1d8] sm:$0xff]  ;;  %193 = vmatpush.msra.mxu2 %v111_v1  ;;  %v144_v9 = vld [vmem:[#allocation5 + $0x1f0] sm:$0xff]  ;;  %v139_v10 = vld [vmem:[#allocation5 + $0x1c8] sm:$0xff] }
  0x18   :  { %213 = vmatpush.msra.mxu3 %v143_v3  ;;  %153 = vmatpush.msra.mxu0 %v110_v7  ;;  %v108_v11 = vld [vmem:[#allocation5 + $0xd0] sm:$0xff]  ;;  %v142_v12 = vld [vmem:[#allocation5 + $0x1e0] sm:$0xff]  ;;  %v105_v15 = vld [vmem:[#allocation5 + $0xb8] sm:$0xff] }
  0x19   :  { %172 = vmatpush.msra.mxu1 %v144_v9  ;;  %194 = vmatpush.msra.mxu2 %v109_v5  ;;  %v106_v13 = vld [vmem:[#allocation5 + $0xc0] sm:$0xff]  ;;  %v140_v14 = vld [vmem:[#allocation5 + $0x1d0] sm:$0xff]  ;;  %v137_v16 = vld [vmem:[#allocation5 + $0x1b8] sm:$0xff] }
  0x1a   :  { %214 = vmatpush.msra.mxu3 %v141_v6  ;;  %154 = vmatpush.msra.mxu0 %v108_v11  ;;  %v104_v17 = vld [vmem:[#allocation5 + $0xb0] sm:$0xff]  ;;  %v138_v18 = vld [vmem:[#allocation5 + $0x1c0] sm:$0xff]  ;;  %v103_v19 = vld [vmem:[#allocation5 + $0xa8] sm:$0xff] }
  0x1b   :  { %173 = vmatpush.msra.mxu1 %v142_v12  ;;  %195 = vmatpush.msra.mxu2 %v107_v8  ;;  %v135_v20 = vld [vmem:[#allocation5 + $0x1a8] sm:$0xff]  ;;  %v102_v21 = vld [vmem:[#allocation5 + $0xa0] sm:$0xff]  ;;  %v136_v22 = vld [vmem:[#allocation5 + $0x1b0] sm:$0xff] }
  0x1c   :  { %215 = vmatpush.msra.mxu3 %v139_v10  ;;  %155 = vmatpush.msra.mxu0 %v106_v13  ;;  %v101_v23 = vld [vmem:[#allocation5 + $0x98] sm:$0xff]  ;;  %v100_v25 = vld [vmem:[#allocation5 + $0x90] sm:$0xff]  ;;  %v134_v26 = vld [vmem:[#allocation5 + $0x1a0] sm:$0xff] }
  0x1d   :  { %174 = vmatpush.msra.mxu1 %v140_v14  ;;  %196 = vmatpush.msra.mxu2 %v105_v15  ;;  %v133_v24 = vld [vmem:[#allocation5 + $0x198] sm:$0xff]  ;;  %v99_v27 = vld [vmem:[#allocation5 + $0x88] sm:$0xff]  ;;  %v98_v29 = vld [vmem:[#allocation5 + $0x80] sm:$0xff] }
  0x1e   :  { %216 = vmatpush.msra.mxu3 %v137_v16  ;;  %156 = vmatpush.msra.mxu0 %v104_v17  ;;  %v131_v28 = vld [vmem:[#allocation5 + $0x188] sm:$0xff]  ;;  %v132_v30 = vld [vmem:[#allocation5 + $0x190] sm:$0xff]  ;;  %v97_v31 = vld [vmem:[#allocation5 + $0x78] sm:$0xff]  ;;  %v234_v16 = vlaneseq }
  0x1f   :  { %175 = vmatpush.msra.mxu1 %v138_v18  ;;  %197 = vmatpush.msra.mxu2 %v103_v19  ;;  %v129_v32 = vld [vmem:[#allocation5 + $0x178] sm:$0xff]  ;;  %v96_v33 = vld [vmem:[#allocation5 + $0x70] sm:$0xff]  ;;  %v130_v34 = vld [vmem:[#allocation5 + $0x180] sm:$0xff] }
  0x20   :  { %217 = vmatpush.msra.mxu3 %v135_v20  ;;  %157 = vmatpush.msra.mxu0 %v102_v21  ;;  %v95_v35 = vld [vmem:[#allocation5 + $0x68] sm:$0xff]  ;;  %v94_v37 = vld [vmem:[#allocation5 + $0x60] sm:$0xff]  ;;  %v128_v38 = vld [vmem:[#allocation5 + $0x170] sm:$0xff]  ;;  %v1078_v17 = vand.u32 127, %v234_v16 }
  0x21   :  { %176 = vmatpush.msra.mxu1 %v136_v22  ;;  %198 = vmatpush.msra.mxu2 %v101_v23  ;;  %v127_v36 = vld [vmem:[#allocation5 + $0x168] sm:$0xff]  ;;  %v93_v39 = vld [vmem:[#allocation5 + $0x58] sm:$0xff]  ;;  %v92_v41 = vld [vmem:[#allocation5 + $0x50] sm:$0xff] }
  0x22   :  { %218 = vmatpush.msra.mxu3 %v133_v24  ;;  %158 = vmatpush.msra.mxu0 %v100_v25  ;;  %v125_v40 = vld [vmem:[#allocation5 + $0x158] sm:$0xff]  ;;  %v126_v42 = vld [vmem:[#allocation5 + $0x160] sm:$0xff]  ;;  %v91_v43 = vld [vmem:[#allocation5 + $0x48] sm:$0xff]  ;;  %v1081_v18 = vadd.s32 128, %v1078_v17 }
  0x23   :  { %177 = vmatpush.msra.mxu1 %v134_v26  ;;  %199 = vmatpush.msra.mxu2 %v99_v27  ;;  %v123_v44 = vld [vmem:[#allocation5 + $0x148] sm:$0xff]  ;;  %v90_v45 = vld [vmem:[#allocation5 + $0x40] sm:$0xff]  ;;  %v124_v46 = vld [vmem:[#allocation5 + $0x150] sm:$0xff] }
  0x24   :  { %219 = vmatpush.msra.mxu3 %v131_v28  ;;  %159 = vmatpush.msra.mxu0 %v98_v29  ;;  %v89_v47 = vld [vmem:[#allocation5 + $0x38] sm:$0xff]  ;;  %v88_v49 = vld [vmem:[#allocation5 + $0x30] sm:$0xff]  ;;  %v122_v50 = vld [vmem:[#allocation5 + $0x140] sm:$0xff] }
  0x25   :  { %178 = vmatpush.msra.mxu1 %v132_v30  ;;  %200 = vmatpush.msra.mxu2 %v97_v31  ;;  %v121_v48 = vld [vmem:[#allocation5 + $0x138] sm:$0xff]  ;;  %v87_v51 = vld [vmem:[#allocation5 + $0x28] sm:$0xff]  ;;  %v86_v53 = vld [vmem:[#allocation5 + $0x20] sm:$0xff] }
  0x26   :  { %220 = vmatpush.msra.mxu3 %v129_v32  ;;  %160 = vmatpush.msra.mxu0 %v96_v33  ;;  %v119_v52 = vld [vmem:[#allocation5 + $0x128] sm:$0xff]  ;;  %v120_v54 = vld [vmem:[#allocation5 + $0x130] sm:$0xff]  ;;  %v85_v55 = vld [vmem:[#allocation5 + $0x18] sm:$0xff] }
  0x27   :  { %179 = vmatpush.msra.mxu1 %v130_v34  ;;  %201 = vmatpush.msra.mxu2 %v95_v35  ;;  %v117_v56 = vld [vmem:[#allocation5 + $0x118] sm:$0xff]  ;;  %v84_v57 = vld [vmem:[#allocation5 + $0x10] sm:$0xff]  ;;  %v118_v58 = vld [vmem:[#allocation5 + $0x120] sm:$0xff] }
  0x28   :  { %221 = vmatpush.msra.mxu3 %v127_v36  ;;  %161 = vmatpush.msra.mxu0 %v94_v37  ;;  %v83_v59 = vld [vmem:[#allocation5 + $0x8] sm:$0xff]  ;;  %v80_v61 = vld [vmem:[#allocation2] sm:$0xff]  ;;  %v81_v62 = vld [vmem:[#allocation2 + $0x8] sm:$0xff] }
  0x29   :  { %180 = vmatpush.msra.mxu1 %v128_v38  ;;  %202 = vmatpush.msra.mxu2 %v93_v39  ;;  %v115_v60 = vld [vmem:[#allocation5 + $0x108] sm:$0xff]  ;;  %v82_v63 = vld [vmem:[#allocation5] sm:$0xff]  ;;  %v116_v0 = vld [vmem:[#allocation5 + $0x110] sm:$0xff] }
  0x2a   :  { %222 = vmatpush.msra.mxu3 %v125_v40  ;;  %162 = vmatpush.msra.mxu0 %v92_v41  ;;  %v114_v1 = vld [vmem:[#allocation5 + $0x100] sm:$0xff] }
  0x2b   :  { %181 = vmatpush.msra.mxu1 %v126_v42  ;;  %203 = vmatpush.msra.mxu2 %v91_v43  ;;  %v146_v2 = vld [vmem:[#allocation7] sm:$0x3] }
  0x2c   :  { %223 = vmatpush.msra.mxu3 %v123_v44  ;;  %163 = vmatpush.msra.mxu0 %v90_v45  ;;  %v148_v3 = vperm.slane %v146_v2, 0  ;;  %v149_v6 = vperm.slane %v146_v2, 1 }
  0x2d   :  { %182 = vmatpush.msra.mxu1 %v124_v46  ;;  %204 = vmatpush.msra.mxu2 %v89_v47 }
  0x2e   :  { %224 = vmatpush.msra.mxu3 %v121_v48  ;;  %164 = vmatpush.msra.mxu0 %v88_v49 }
  0x2f   :  { %183 = vmatpush.msra.mxu1 %v122_v50  ;;  %205 = vmatpush.msra.mxu2 %v87_v51 }
  0x30   :  { %225 = vmatpush.msra.mxu3 %v119_v52  ;;  %165 = vmatpush.msra.mxu0 %v86_v53 }
  0x31   :  { %184 = vmatpush.msra.mxu1 %v120_v54  ;;  %206 = vmatpush.msra.mxu2 %v85_v55 }
  0x32   :  { %226 = vmatpush.msra.mxu3 %v117_v56  ;;  %166 = vmatpush.msra.mxu0 %v84_v57 }
  0x33   :  { %185 = vmatpush.msra.mxu1 %v118_v58  ;;  %207 = vmatpush.msra.mxu2 %v83_v59 }
  0x34   :  { %227 = vmatpush.msra.mxu3 %v115_v60  ;;  %208 = vmatmul.f32.vlgmr.msra.gmra.mxu2 %v80_v61 }
  0x35   :  { %228 = vmatmul.f32.vlgmr.msra.gmra.mxu3 %v81_v62  ;;  %167 = vmatpush.msra.mxu0 %v82_v63 }
  0x36   :  { %186 = vmatpush.msra.mxu1 %v116_v0  ;;  %168 = vmatmul.f32.vlgmr.msra.gmra.mxu0 %v80_v61 }
  0x38   :  { %187 = vmatpush.msra.mxu1 %v114_v1 }
  0x39   :  { %188 = vmatmul.f32.vlgmr.msra.gmra.mxu1 %v81_v62 }
  0xb3   :  { %v169_v4 = vpop.f32.mrf.mxu0 }
  0xb4   :  { %v170_v5 = vadd.f32 %v169_v4, %v148_v3 }
  0xb6   :  { %v189_v7 = vpop.f32.mrf.mxu1 }
  0xb7   :  { %v190_v8 = vadd.f32 %v189_v7, %v170_v5  ;;  %v209_v9 = vpop.f32.mrf.mxu2 }
  0xb8   :  { %v229_v10 = vpop.f32.mrf.mxu3  ;;  %v210_v11 = vadd.f32 %v209_v9, %v149_v6 }
  0xb9   :  { %v1072_v12 = vmax.f32 %v190_v8, 0.0 }
  0xba   :  { %v230_v13 = vadd.f32 %v229_v10, %v210_v11 }
  0xbc   :  { %v1074_v14 = vmax.f32 %v230_v13, 0.0 }
  0xbe   :  { %v237_v15 = vmax.f32 %v1072_v12, %v1074_v14 }
  0xc0   :  { %238 = vmax.xlane.f32.xlu0 %v237_v15 }
 0x133   :  { %v239_v19 = vpop.xlane.xlu0 %238 }
 0x134   :  { %vm240_vm0 = vcmp.eq.f32.partialorder %v1072_v12, %v239_v19  ;;  %vm241_vm1 = vcmp.eq.f32.partialorder %v1074_v14, %v239_v19 }
 0x135   :  { %v242_v20 = vsel %vm240_vm0, %v1078_v17, 256  ;;  %v243_v21 = vsel %vm241_vm1, %v1081_v18, 256 }
 0x136   :  { %vm244_vm2 = vcmp.lt.s32.totalorder %v242_v20, %v243_v21 }
 0x137   :  { %v245_v22 = vsel %vm244_vm2, %v242_v20, %v243_v21 }
 0x138   :  { %v247_v23 = vshra.s32 %v245_v22, 16  ;;  %v246_v25 = vand.u32 65535, %v245_v22 }
 0x13a   :  { %v249_v24 = vcvt.s32.f32 %v247_v23  ;;  %v248_v27 = vcvt.s32.f32 %v246_v25 }
 0x13c   :  { %250 = vmin.xlane.f32.xlu0 %v249_v24 }
 0x1af   :  { %v251_v26 = vpop.xlane.xlu0 %250 }
 0x1b0   :  { %vm252_vm3 = vcmp.eq.f32.partialorder %v249_v24, %v251_v26  ;;  %v257_v29 = vcvt.f32.s32 %v251_v26 }
 0x1b1   :  { %v253_v28 = vsel %vm252_vm3, %v248_v27, inf }
 0x1b2   :  { %254 = vmin.xlane.f32.xlu1 %v253_v28  ;;  %v258_v31 = vshll.u32 %v257_v29, 16 }
 0x225   :  { %v255_v30 = vpop.xlane.xlu1 %254 }
 0x226   :  { %v256_v32 = vcvt.f32.s32 %v255_v30 }
 0x228   :  { %v259_v33 = vadd.s32 %v258_v31, %v256_v32 }
 0x22a   :  { %vm260_vm4 = vcmp.eq.s32.totalorder %v1078_v17, %v259_v33  ;;  %vm261_vm5 = vcmp.eq.s32.totalorder %v1081_v18, %v259_v33 }
 0x22b   :  { %v262_v34 = vsel %vm260_vm4, -inf, %v1072_v12  ;;  %v263_v35 = vsel %vm261_vm5, -inf, %v1074_v14 }
 0x22c   :  { %v264_v36 = vmax.f32 %v262_v34, %v263_v35 }
 0x22e   :  { %265 = vmax.xlane.f32.xlu1 %v264_v36 }
 0x2a1   :  { %v266_v37 = vpop.xlane.xlu1 %265 }
 0x2a2   :  { %vm267_vm6 = vcmp.eq.f32.partialorder %v262_v34, %v266_v37  ;;  %vm268_vm7 = vcmp.eq.f32.partialorder %v263_v35, %v266_v37 }
 0x2a3   :  { %v269_v38 = vsel %vm267_vm6, %v1078_v17, 256  ;;  %v270_v39 = vsel %vm268_vm7, %v1081_v18, 256 }
 0x2a4   :  { %vm271_vm8 = vcmp.lt.s32.totalorder %v269_v38, %v270_v39 }
 0x2a5   :  { %v272_v40 = vsel %vm271_vm8, %v269_v38, %v270_v39 }
 0x2a6   :  { %v274_v41 = vshra.s32 %v272_v40, 16  ;;  %v273_v43 = vand.u32 65535, %v272_v40 }
 0x2a8   :  { %v276_v42 = vcvt.s32.f32 %v274_v41  ;;  %v275_v45 = vcvt.s32.f32 %v273_v43 }
 0x2aa   :  { %277 = vmin.xlane.f32.xlu2 %v276_v42 }
 0x31d   :  { %v278_v44 = vpop.xlane.xlu2 %277 }
 0x31e   :  { %vm279_vm9 = vcmp.eq.f32.partialorder %v276_v42, %v278_v44  ;;  %v284_v47 = vcvt.f32.s32 %v278_v44 }
 0x31f   :  { %v280_v46 = vsel %vm279_vm9, %v275_v45, inf }
 0x320   :  { %281 = vmin.xlane.f32.xlu2 %v280_v46  ;;  %v285_v49 = vshll.u32 %v284_v47, 16 }
 0x393   :  { %v282_v48 = vpop.xlane.xlu2 %281 }
 0x394   :  { %v283_v50 = vcvt.f32.s32 %v282_v48 }
 0x396   :  { %v286_v51 = vadd.s32 %v285_v49, %v283_v50 }
 0x398   :  { %vm287_vm10 = vcmp.eq.s32.totalorder %v1078_v17, %v286_v51  ;;  %vm288_vm11 = vcmp.eq.s32.totalorder %v1081_v18, %v286_v51 }
 0x399   :  { %v289_v52 = vsel %vm287_vm10, -inf, %v262_v34  ;;  %v290_v53 = vsel %vm288_vm11, -inf, %v263_v35 }
 0x39a   :  { %v291_v54 = vmax.f32 %v289_v52, %v290_v53 }
 0x39c   :  { %292 = vmax.xlane.f32.xlu0 %v291_v54 }
 0x40f   :  { %v293_v55 = vpop.xlane.xlu0 %292 }
 0x410   :  { %vm294_vm12 = vcmp.eq.f32.partialorder %v289_v52, %v293_v55  ;;  %vm295_vm13 = vcmp.eq.f32.partialorder %v290_v53, %v293_v55 }
 0x411   :  { %v296_v56 = vsel %vm294_vm12, %v1078_v17, 256  ;;  %v297_v57 = vsel %vm295_vm13, %v1081_v18, 256 }
 0x412   :  { %vm298_vm14 = vcmp.lt.s32.totalorder %v296_v56, %v297_v57 }
 0x413   :  { %v299_v58 = vsel %vm298_vm14, %v296_v56, %v297_v57 }
 0x414   :  { %v301_v59 = vshra.s32 %v299_v58, 16  ;;  %v300_v61 = vand.u32 65535, %v299_v58 }
 0x416   :  { %v303_v60 = vcvt.s32.f32 %v301_v59  ;;  %v302_v63 = vcvt.s32.f32 %v300_v61 }
 0x418   :  { %304 = vmin.xlane.f32.xlu1 %v303_v60 }
 0x48b   :  { %v305_v62 = vpop.xlane.xlu1 %304 }
 0x48c   :  { %vm306_vm15 = vcmp.eq.f32.partialorder %v303_v60, %v305_v62  ;;  %v311_v1 = vcvt.f32.s32 %v305_v62 }
 0x48d   :  { %v307_v0 = vsel %vm306_vm15, %v302_v63, inf }
 0x48e   :  { %308 = vmin.xlane.f32.xlu2 %v307_v0  ;;  %v312_v3 = vshll.u32 %v311_v1, 16 }
 0x501   :  { %v309_v2 = vpop.xlane.xlu2 %308 }
 0x502   :  { %v310_v4 = vcvt.f32.s32 %v309_v2 }
 0x504   :  { %v313_v5 = vadd.s32 %v312_v3, %v310_v4 }
 0x506   :  { %vm314_vm0 = vcmp.eq.s32.totalorder %v1078_v17, %v313_v5  ;;  %vm315_vm1 = vcmp.eq.s32.totalorder %v1081_v18, %v313_v5 }
 0x507   :  { %v316_v6 = vsel %vm314_vm0, -inf, %v289_v52  ;;  %v317_v7 = vsel %vm315_vm1, -inf, %v290_v53 }
 0x508   :  { %v318_v8 = vmax.f32 %v316_v6, %v317_v7 }
 0x50a   :  { %319 = vmax.xlane.f32.xlu0 %v318_v8 }
 0x57d   :  { %v320_v9 = vpop.xlane.xlu0 %319 }
 0x57e   :  { %vm321_vm2 = vcmp.eq.f32.partialorder %v316_v6, %v320_v9  ;;  %vm322_vm3 = vcmp.eq.f32.partialorder %v317_v7, %v320_v9 }
 0x57f   :  { %v323_v10 = vsel %vm321_vm2, %v1078_v17, 256  ;;  %v324_v11 = vsel %vm322_vm3, %v1081_v18, 256 }
 0x580   :  { %vm325_vm4 = vcmp.lt.s32.totalorder %v323_v10, %v324_v11 }
 0x581   :  { %v326_v13 = vsel %vm325_vm4, %v323_v10, %v324_v11 }
 0x582   :  { %v328_v15 = vshra.s32 %v326_v13, 16  ;;  %v327_v19 = vand.u32 65535, %v326_v13 }
 0x584   :  { %v330_v16 = vcvt.s32.f32 %v328_v15  ;;  %v329_v21 = vcvt.s32.f32 %v327_v19 }
 0x586   :  { %331 = vmin.xlane.f32.xlu1 %v330_v16 }
 0x5f9   :  { %v332_v20 = vpop.xlane.xlu1 %331 }
 0x5fa   :  { %vm333_vm5 = vcmp.eq.f32.partialorder %v330_v16, %v332_v20  ;;  %v338_v23 = vcvt.f32.s32 %v332_v20 }
 0x5fb   :  { %v334_v22 = vsel %vm333_vm5, %v329_v21, inf }
 0x5fc   :  { %335 = vmin.xlane.f32.xlu2 %v334_v22  ;;  %v339_v25 = vshll.u32 %v338_v23, 16 }
 0x66f   :  { %v336_v24 = vpop.xlane.xlu2 %335 }
 0x670   :  { %v337_v26 = vcvt.f32.s32 %v336_v24 }
 0x672   :  { %v340_v27 = vadd.s32 %v339_v25, %v337_v26 }
 0x674   :  { %vm341_vm6 = vcmp.eq.s32.totalorder %v1078_v17, %v340_v27  ;;  %vm342_vm7 = vcmp.eq.s32.totalorder %v1081_v18, %v340_v27 }
 0x675   :  { %v343_v28 = vsel %vm341_vm6, -inf, %v316_v6  ;;  %v344_v29 = vsel %vm342_vm7, -inf, %v317_v7 }
 0x676   :  { %v345_v30 = vmax.f32 %v343_v28, %v344_v29 }
 0x678   :  { %346 = vmax.xlane.f32.xlu0 %v345_v30 }
 0x6eb   :  { %v347_v31 = vpop.xlane.xlu0 %346 }
 0x6ec   :  { %vm348_vm8 = vcmp.eq.f32.partialorder %v343_v28, %v347_v31  ;;  %vm349_vm9 = vcmp.eq.f32.partialorder %v344_v29, %v347_v31 }
 0x6ed   :  { %v350_v32 = vsel %vm348_vm8, %v1078_v17, 256  ;;  %v351_v33 = vsel %vm349_vm9, %v1081_v18, 256 }
 0x6ee   :  { %vm352_vm10 = vcmp.lt.s32.totalorder %v350_v32, %v351_v33 }
 0x6ef   :  { %v353_v34 = vsel %vm352_vm10, %v350_v32, %v351_v33 }
 0x6f0   :  { %v355_v35 = vshra.s32 %v353_v34, 16  ;;  %v354_v37 = vand.u32 65535, %v353_v34 }
 0x6f2   :  { %v357_v36 = vcvt.s32.f32 %v355_v35  ;;  %v356_v39 = vcvt.s32.f32 %v354_v37 }
 0x6f4   :  { %358 = vmin.xlane.f32.xlu1 %v357_v36 }
 0x767   :  { %v359_v38 = vpop.xlane.xlu1 %358 }
 0x768   :  { %vm360_vm11 = vcmp.eq.f32.partialorder %v357_v36, %v359_v38  ;;  %v365_v41 = vcvt.f32.s32 %v359_v38 }
 0x769   :  { %v361_v40 = vsel %vm360_vm11, %v356_v39, inf }
 0x76a   :  { %362 = vmin.xlane.f32.xlu2 %v361_v40  ;;  %v366_v43 = vshll.u32 %v365_v41, 16 }
 0x7dd   :  { %v363_v42 = vpop.xlane.xlu2 %362 }
 0x7de   :  { %v364_v44 = vcvt.f32.s32 %v363_v42 }
 0x7e0   :  { %v367_v45 = vadd.s32 %v366_v43, %v364_v44 }
 0x7e2   :  { %vm368_vm12 = vcmp.eq.s32.totalorder %v1078_v17, %v367_v45  ;;  %vm369_vm13 = vcmp.eq.s32.totalorder %v1081_v18, %v367_v45 }
 0x7e3   :  { %v370_v46 = vsel %vm368_vm12, -inf, %v343_v28  ;;  %v371_v47 = vsel %vm369_vm13, -inf, %v344_v29 }
 0x7e4   :  { %v372_v48 = vmax.f32 %v370_v46, %v371_v47 }
 0x7e6   :  { %373 = vmax.xlane.f32.xlu0 %v372_v48 }
 0x859   :  { %v374_v49 = vpop.xlane.xlu0 %373 }
 0x85a   :  { %vm375_vm14 = vcmp.eq.f32.partialorder %v370_v46, %v374_v49  ;;  %vm376_vm15 = vcmp.eq.f32.partialorder %v371_v47, %v374_v49 }
 0x85b   :  { %v377_v50 = vsel %vm375_vm14, %v1078_v17, 256  ;;  %v378_v51 = vsel %vm376_vm15, %v1081_v18, 256 }
 0x85c   :  { %vm379_vm0 = vcmp.lt.s32.totalorder %v377_v50, %v378_v51 }
 0x85d   :  { %v380_v52 = vsel %vm379_vm0, %v377_v50, %v378_v51 }
 0x85e   :  { %v382_v53 = vshra.s32 %v380_v52, 16  ;;  %v381_v55 = vand.u32 65535, %v380_v52 }
 0x860   :  { %v384_v54 = vcvt.s32.f32 %v382_v53  ;;  %v383_v57 = vcvt.s32.f32 %v381_v55 }
 0x862   :  { %385 = vmin.xlane.f32.xlu1 %v384_v54 }
 0x8d5   :  { %v386_v56 = vpop.xlane.xlu1 %385 }
 0x8d6   :  { %vm387_vm1 = vcmp.eq.f32.partialorder %v384_v54, %v386_v56  ;;  %v392_v59 = vcvt.f32.s32 %v386_v56 }
 0x8d7   :  { %v388_v58 = vsel %vm387_vm1, %v383_v57, inf }
 0x8d8   :  { %389 = vmin.xlane.f32.xlu2 %v388_v58  ;;  %v393_v61 = vshll.u32 %v392_v59, 16 }
 0x94b   :  { %v390_v60 = vpop.xlane.xlu2 %389 }
 0x94c   :  { %v391_v62 = vcvt.f32.s32 %v390_v60 }
 0x94e   :  { %v394_v63 = vadd.s32 %v393_v61, %v391_v62 }
 0x950   :  { %vm395_vm2 = vcmp.eq.s32.totalorder %v1078_v17, %v394_v63  ;;  %vm396_vm3 = vcmp.eq.s32.totalorder %v1081_v18, %v394_v63 }
 0x951   :  { %v397_v0 = vsel %vm395_vm2, -inf, %v370_v46  ;;  %v398_v1 = vsel %vm396_vm3, -inf, %v371_v47 }
 0x952   :  { %v399_v2 = vmax.f32 %v397_v0, %v398_v1 }
 0x954   :  { %400 = vmax.xlane.f32.xlu0 %v399_v2 }
 0x9c7   :  { %v401_v3 = vpop.xlane.xlu0 %400 }
 0x9c8   :  { %vm402_vm4 = vcmp.eq.f32.partialorder %v397_v0, %v401_v3  ;;  %vm403_vm5 = vcmp.eq.f32.partialorder %v398_v1, %v401_v3 }
 0x9c9   :  { %v404_v4 = vsel %vm402_vm4, %v1078_v17, 256  ;;  %v405_v5 = vsel %vm403_vm5, %v1081_v18, 256 }
 0x9ca   :  { %vm406_vm6 = vcmp.lt.s32.totalorder %v404_v4, %v405_v5 }
 0x9cb   :  { %v407_v6 = vsel %vm406_vm6, %v404_v4, %v405_v5 }
 0x9cc   :  { %v409_v7 = vshra.s32 %v407_v6, 16  ;;  %v408_v9 = vand.u32 65535, %v407_v6 }
 0x9ce   :  { %v411_v8 = vcvt.s32.f32 %v409_v7  ;;  %v410_v11 = vcvt.s32.f32 %v408_v9 }
 0x9d0   :  { %412 = vmin.xlane.f32.xlu1 %v411_v8 }
 0xa43   :  { %v413_v10 = vpop.xlane.xlu1 %412 }
 0xa44   :  { %vm414_vm7 = vcmp.eq.f32.partialorder %v411_v8, %v413_v10  ;;  %v419_v15 = vcvt.f32.s32 %v413_v10 }
 0xa45   :  { %v415_v13 = vsel %vm414_vm7, %v410_v11, inf }
 0xa46   :  { %416 = vmin.xlane.f32.xlu2 %v415_v13  ;;  %v420_v19 = vshll.u32 %v419_v15, 16 }
 0xab9   :  { %v417_v16 = vpop.xlane.xlu2 %416 }
 0xaba   :  { %v418_v20 = vcvt.f32.s32 %v417_v16 }
 0xabc   :  { %v421_v21 = vadd.s32 %v420_v19, %v418_v20 }
 0xabe   :  { %vm422_vm8 = vcmp.eq.s32.totalorder %v1078_v17, %v421_v21  ;;  %vm423_vm9 = vcmp.eq.s32.totalorder %v1081_v18, %v421_v21 }
 0xabf   :  { %v424_v22 = vsel %vm422_vm8, -inf, %v397_v0  ;;  %v425_v23 = vsel %vm423_vm9, -inf, %v398_v1 }
 0xac0   :  { %v426_v24 = vmax.f32 %v424_v22, %v425_v23 }
 0xac2   :  { %427 = vmax.xlane.f32.xlu0 %v426_v24 }
 0xb35   :  { %v428_v25 = vpop.xlane.xlu0 %427 }
 0xb36   :  { %vm429_vm10 = vcmp.eq.f32.partialorder %v424_v22, %v428_v25  ;;  %vm430_vm11 = vcmp.eq.f32.partialorder %v425_v23, %v428_v25 }
 0xb37   :  { %v431_v26 = vsel %vm429_vm10, %v1078_v17, 256  ;;  %v432_v27 = vsel %vm430_vm11, %v1081_v18, 256 }
 0xb38   :  { %vm433_vm12 = vcmp.lt.s32.totalorder %v431_v26, %v432_v27 }
 0xb39   :  { %v434_v28 = vsel %vm433_vm12, %v431_v26, %v432_v27 }
 0xb3a   :  { %v436_v29 = vshra.s32 %v434_v28, 16  ;;  %v435_v31 = vand.u32 65535, %v434_v28 }
 0xb3c   :  { %v438_v30 = vcvt.s32.f32 %v436_v29  ;;  %v437_v33 = vcvt.s32.f32 %v435_v31 }
 0xb3e   :  { %439 = vmin.xlane.f32.xlu1 %v438_v30 }
 0xbb1   :  { %v440_v32 = vpop.xlane.xlu1 %439 }
 0xbb2   :  { %vm441_vm13 = vcmp.eq.f32.partialorder %v438_v30, %v440_v32  ;;  %v446_v35 = vcvt.f32.s32 %v440_v32 }
 0xbb3   :  { %v442_v34 = vsel %vm441_vm13, %v437_v33, inf }
 0xbb4   :  { %443 = vmin.xlane.f32.xlu2 %v442_v34  ;;  %v447_v37 = vshll.u32 %v446_v35, 16 }
 0xc27   :  { %v444_v36 = vpop.xlane.xlu2 %443 }
 0xc28   :  { %v445_v38 = vcvt.f32.s32 %v444_v36 }
 0xc2a   :  { %v448_v39 = vadd.s32 %v447_v37, %v445_v38 }
 0xc2c   :  { %vm449_vm14 = vcmp.eq.s32.totalorder %v1078_v17, %v448_v39  ;;  %vm450_vm15 = vcmp.eq.s32.totalorder %v1081_v18, %v448_v39 }
 0xc2d   :  { %v451_v40 = vsel %vm449_vm14, -inf, %v424_v22  ;;  %v452_v41 = vsel %vm450_vm15, -inf, %v425_v23 }
 0xc2e   :  { %v453_v42 = vmax.f32 %v451_v40, %v452_v41 }
 0xc30   :  { %454 = vmax.xlane.f32.xlu0 %v453_v42 }
 0xca3   :  { %v455_v43 = vpop.xlane.xlu0 %454 }
 0xca4   :  { %vm456_vm0 = vcmp.eq.f32.partialorder %v451_v40, %v455_v43  ;;  %vm457_vm1 = vcmp.eq.f32.partialorder %v452_v41, %v455_v43 }
 0xca5   :  { %v458_v44 = vsel %vm456_vm0, %v1078_v17, 256  ;;  %v459_v45 = vsel %vm457_vm1, %v1081_v18, 256 }
 0xca6   :  { %vm460_vm2 = vcmp.lt.s32.totalorder %v458_v44, %v459_v45 }
 0xca7   :  { %v461_v46 = vsel %vm460_vm2, %v458_v44, %v459_v45 }
 0xca8   :  { %v463_v47 = vshra.s32 %v461_v46, 16  ;;  %v462_v49 = vand.u32 65535, %v461_v46 }
 0xcaa   :  { %v465_v48 = vcvt.s32.f32 %v463_v47  ;;  %v464_v51 = vcvt.s32.f32 %v462_v49 }
 0xcac   :  { %466 = vmin.xlane.f32.xlu1 %v465_v48 }
 0xd1f   :  { %v467_v50 = vpop.xlane.xlu1 %466 }
 0xd20   :  { %vm468_vm3 = vcmp.eq.f32.partialorder %v465_v48, %v467_v50  ;;  %v473_v53 = vcvt.f32.s32 %v467_v50 }
 0xd21   :  { %v469_v52 = vsel %vm468_vm3, %v464_v51, inf }
 0xd22   :  { %470 = vmin.xlane.f32.xlu2 %v469_v52  ;;  %v474_v55 = vshll.u32 %v473_v53, 16 }
 0xd95   :  { %v471_v54 = vpop.xlane.xlu2 %470 }
 0xd96   :  { %v472_v56 = vcvt.f32.s32 %v471_v54 }
 0xd98   :  { %v475_v57 = vadd.s32 %v474_v55, %v472_v56 }
 0xd9a   :  { %vm476_vm4 = vcmp.eq.s32.totalorder %v1078_v17, %v475_v57  ;;  %vm477_vm5 = vcmp.eq.s32.totalorder %v1081_v18, %v475_v57 }
 0xd9b   :  { %v478_v58 = vsel %vm476_vm4, -inf, %v451_v40  ;;  %v479_v59 = vsel %vm477_vm5, -inf, %v452_v41 }
 0xd9c   :  { %v480_v60 = vmax.f32 %v478_v58, %v479_v59 }
 0xd9e   :  { %481 = vmax.xlane.f32.xlu0 %v480_v60 }
 0xe11   :  { %v482_v61 = vpop.xlane.xlu0 %481 }
 0xe12   :  { %vm483_vm6 = vcmp.eq.f32.partialorder %v478_v58, %v482_v61  ;;  %vm484_vm7 = vcmp.eq.f32.partialorder %v479_v59, %v482_v61 }
 0xe13   :  { %v485_v62 = vsel %vm483_vm6, %v1078_v17, 256  ;;  %v486_v63 = vsel %vm484_vm7, %v1081_v18, 256 }
 0xe14   :  { %vm487_vm8 = vcmp.lt.s32.totalorder %v485_v62, %v486_v63 }
 0xe15   :  { %v488_v0 = vsel %vm487_vm8, %v485_v62, %v486_v63 }
 0xe16   :  { %v490_v1 = vshra.s32 %v488_v0, 16  ;;  %v489_v3 = vand.u32 65535, %v488_v0 }
 0xe18   :  { %v492_v2 = vcvt.s32.f32 %v490_v1  ;;  %v491_v5 = vcvt.s32.f32 %v489_v3 }
 0xe1a   :  { %493 = vmin.xlane.f32.xlu1 %v492_v2 }
 0xe8d   :  { %v494_v4 = vpop.xlane.xlu1 %493 }
 0xe8e   :  { %vm495_vm9 = vcmp.eq.f32.partialorder %v492_v2, %v494_v4  ;;  %v500_v7 = vcvt.f32.s32 %v494_v4 }
 0xe8f   :  { %v496_v6 = vsel %vm495_vm9, %v491_v5, inf }
 0xe90   :  { %497 = vmin.xlane.f32.xlu2 %v496_v6  ;;  %v501_v9 = vshll.u32 %v500_v7, 16 }
 0xf03   :  { %v498_v8 = vpop.xlane.xlu2 %497 }
 0xf04   :  { %v499_v10 = vcvt.f32.s32 %v498_v8 }
 0xf06   :  { %v502_v11 = vadd.s32 %v501_v9, %v499_v10 }
 0xf08   :  { %vm503_vm10 = vcmp.eq.s32.totalorder %v1078_v17, %v502_v11  ;;  %vm504_vm11 = vcmp.eq.s32.totalorder %v1081_v18, %v502_v11 }
 0xf09   :  { %v505_v13 = vsel %vm503_vm10, -inf, %v478_v58  ;;  %v506_v15 = vsel %vm504_vm11, -inf, %v479_v59 }
 0xf0a   :  { %v507_v16 = vmax.f32 %v505_v13, %v506_v15 }
 0xf0c   :  { %508 = vmax.xlane.f32.xlu0 %v507_v16 }
 0xf7f   :  { %v509_v19 = vpop.xlane.xlu0 %508 }
 0xf80   :  { %vm510_vm12 = vcmp.eq.f32.partialorder %v505_v13, %v509_v19  ;;  %vm511_vm13 = vcmp.eq.f32.partialorder %v506_v15, %v509_v19 }
 0xf81   :  { %v512_v20 = vsel %vm510_vm12, %v1078_v17, 256  ;;  %v513_v21 = vsel %vm511_vm13, %v1081_v18, 256 }
 0xf82   :  { %vm514_vm14 = vcmp.lt.s32.totalorder %v512_v20, %v513_v21 }
 0xf83   :  { %v515_v22 = vsel %vm514_vm14, %v512_v20, %v513_v21 }
 0xf84   :  { %v517_v23 = vshra.s32 %v515_v22, 16  ;;  %v516_v25 = vand.u32 65535, %v515_v22 }
 0xf86   :  { %v519_v24 = vcvt.s32.f32 %v517_v23  ;;  %v518_v27 = vcvt.s32.f32 %v516_v25 }
 0xf88   :  { %520 = vmin.xlane.f32.xlu1 %v519_v24 }
 0xffb   :  { %v521_v26 = vpop.xlane.xlu1 %520 }
 0xffc   :  { %vm522_vm15 = vcmp.eq.f32.partialorder %v519_v24, %v521_v26  ;;  %v527_v29 = vcvt.f32.s32 %v521_v26 }
 0xffd   :  { %v523_v28 = vsel %vm522_vm15, %v518_v27, inf }
 0xffe   :  { %524 = vmin.xlane.f32.xlu2 %v523_v28  ;;  %v528_v31 = vshll.u32 %v527_v29, 16 }
0x1071   :  { %v525_v30 = vpop.xlane.xlu2 %524 }
0x1072   :  { %v526_v32 = vcvt.f32.s32 %v525_v30 }
0x1074   :  { %v529_v33 = vadd.s32 %v528_v31, %v526_v32 }
0x1076   :  { %vm530_vm0 = vcmp.eq.s32.totalorder %v1078_v17, %v529_v33  ;;  %vm531_vm1 = vcmp.eq.s32.totalorder %v1081_v18, %v529_v33 }
0x1077   :  { %v532_v34 = vsel %vm530_vm0, -inf, %v505_v13  ;;  %v533_v35 = vsel %vm531_vm1, -inf, %v506_v15 }
0x1078   :  { %v534_v36 = vmax.f32 %v532_v34, %v533_v35 }
0x107a   :  { %535 = vmax.xlane.f32.xlu0 %v534_v36 }
0x10ed   :  { %v536_v37 = vpop.xlane.xlu0 %535 }
0x10ee   :  { %vm537_vm2 = vcmp.eq.f32.partialorder %v532_v34, %v536_v37  ;;  %vm538_vm3 = vcmp.eq.f32.partialorder %v533_v35, %v536_v37 }
0x10ef   :  { %v539_v38 = vsel %vm537_vm2, %v1078_v17, 256  ;;  %v540_v39 = vsel %vm538_vm3, %v1081_v18, 256 }
0x10f0   :  { %vm541_vm4 = vcmp.lt.s32.totalorder %v539_v38, %v540_v39 }
0x10f1   :  { %v542_v40 = vsel %vm541_vm4, %v539_v38, %v540_v39 }
0x10f2   :  { %v544_v41 = vshra.s32 %v542_v40, 16  ;;  %v543_v43 = vand.u32 65535, %v542_v40 }
0x10f4   :  { %v546_v42 = vcvt.s32.f32 %v544_v41  ;;  %v545_v45 = vcvt.s32.f32 %v543_v43 }
0x10f6   :  { %547 = vmin.xlane.f32.xlu1 %v546_v42 }
0x1169   :  { %v548_v44 = vpop.xlane.xlu1 %547 }
0x116a   :  { %vm549_vm5 = vcmp.eq.f32.partialorder %v546_v42, %v548_v44  ;;  %v554_v47 = vcvt.f32.s32 %v548_v44 }
0x116b   :  { %v550_v46 = vsel %vm549_vm5, %v545_v45, inf }
0x116c   :  { %551 = vmin.xlane.f32.xlu2 %v550_v46  ;;  %v555_v49 = vshll.u32 %v554_v47, 16 }
0x11df   :  { %v552_v48 = vpop.xlane.xlu2 %551 }
0x11e0   :  { %v553_v50 = vcvt.f32.s32 %v552_v48 }
0x11e2   :  { %v556_v51 = vadd.s32 %v555_v49, %v553_v50 }
0x11e4   :  { %vm557_vm6 = vcmp.eq.s32.totalorder %v1078_v17, %v556_v51  ;;  %vm558_vm7 = vcmp.eq.s32.totalorder %v1081_v18, %v556_v51 }
0x11e5   :  { %v559_v52 = vsel %vm557_vm6, -inf, %v532_v34  ;;  %v560_v53 = vsel %vm558_vm7, -inf, %v533_v35 }
0x11e6   :  { %v561_v54 = vmax.f32 %v559_v52, %v560_v53 }
0x11e8   :  { %562 = vmax.xlane.f32.xlu0 %v561_v54 }
0x125b   :  { %v563_v55 = vpop.xlane.xlu0 %562 }
0x125c   :  { %vm564_vm8 = vcmp.eq.f32.partialorder %v559_v52, %v563_v55  ;;  %vm565_vm9 = vcmp.eq.f32.partialorder %v560_v53, %v563_v55  ;;  %v705_v55 = vld [vmem:[#allocation8 + $0xf0] sm:$0xff] }
0x125d   :  { %v566_v56 = vsel %vm564_vm8, %v1078_v17, 256  ;;  %v567_v57 = vsel %vm565_vm9, %v1081_v18, 256  ;;  %739 = vmatpush.msrb.mxu0 %v705_v55  ;;  %v679_v55 = vld [vmem:[#allocation8 + $0x20] sm:$0xff] }
0x125e   :  { %vm568_vm10 = vcmp.lt.s32.totalorder %v566_v56, %v567_v57 }
0x125f   :  { %v569_v58 = vsel %vm568_vm10, %v566_v56, %v567_v57  ;;  %v737_v56 = vld [vmem:[#allocation8 + $0x1f0] sm:$0xff]  ;;  %v706_v57 = vld [vmem:[#allocation8 + $0xf8] sm:$0xff] }
0x1260   :  { %v571_v59 = vshra.s32 %v569_v58, 16  ;;  %v570_v61 = vand.u32 65535, %v569_v58  ;;  %759 = vmatpush.msrb.mxu1 %v737_v56  ;;  %v738_v58 = vld [vmem:[#allocation8 + $0x1f8] sm:$0xff]  ;;  %779 = vmatpush.msrb.mxu2 %v706_v57  ;;  %v711_v56 = vld [vmem:[#allocation8 + $0x120] sm:$0xff]  ;;  %v680_v57 = vld [vmem:[#allocation8 + $0x28] sm:$0xff] }
0x1261   :  { %799 = vmatpush.msrb.mxu3 %v738_v58  ;;  %v677_v58 = vld [vmem:[#allocation8 + $0x10] sm:$0xff] }
0x1262   :  { %v573_v60 = vcvt.s32.f32 %v571_v59  ;;  %v572_v63 = vcvt.s32.f32 %v570_v61  ;;  %v703_v59 = vld [vmem:[#allocation8 + $0xe0] sm:$0xff]  ;;  %v704_v61 = vld [vmem:[#allocation8 + $0xe8] sm:$0xff] }
0x1263   :  { %740 = vmatpush.msrb.mxu0 %v703_v59  ;;  %780 = vmatpush.msrb.mxu2 %v704_v61  ;;  %v678_v59 = vld [vmem:[#allocation8 + $0x18] sm:$0xff]  ;;  %v675_v61 = vld [vmem:[#allocation8] sm:$0xff] }
0x1264   :  { %574 = vmin.xlane.f32.xlu1 %v573_v60 }
0x12d7   :  { %v575_v62 = vpop.xlane.xlu1 %574 }
0x12d8   :  { %vm576_vm11 = vcmp.eq.f32.partialorder %v573_v60, %v575_v62  ;;  %v581_v1 = vcvt.f32.s32 %v575_v62  ;;  %v735_v60 = vld [vmem:[#allocation8 + $0x1e0] sm:$0xff]  ;;  %v736_v62 = vld [vmem:[#allocation8 + $0x1e8] sm:$0xff] }
0x12d9   :  { %v577_v0 = vsel %vm576_vm11, %v572_v63, inf  ;;  %v701_v63 = vld [vmem:[#allocation8 + $0xd0] sm:$0xff]  ;;  %760 = vmatpush.msrb.mxu1 %v735_v60  ;;  %800 = vmatpush.msrb.mxu3 %v736_v62  ;;  %v710_v60 = vld [vmem:[#allocation8 + $0x118] sm:$0xff]  ;;  %v707_v62 = vld [vmem:[#allocation8 + $0x100] sm:$0xff] }
0x12da   :  { %578 = vmin.xlane.f32.xlu2 %v577_v0  ;;  %v582_v3 = vshll.u32 %v581_v1, 16  ;;  %v733_v0 = vld [vmem:[#allocation8 + $0x1d0] sm:$0xff]  ;;  %v702_v1 = vld [vmem:[#allocation8 + $0xd8] sm:$0xff]  ;;  %741 = vmatpush.msrb.mxu0 %v701_v63  ;;  %v676_v63 = vld [vmem:[#allocation8 + $0x8] sm:$0xff] }
0x12db   :  { %761 = vmatpush.msrb.mxu1 %v733_v0  ;;  %781 = vmatpush.msrb.mxu2 %v702_v1  ;;  %v708_v0 = vld [vmem:[#allocation8 + $0x108] sm:$0xff] }
0x134d   :  { %v579_v2 = vpop.xlane.xlu2 %578 }
0x134e   :  { %v580_v4 = vcvt.f32.s32 %v579_v2  ;;  %v734_v2 = vld [vmem:[#allocation8 + $0x1d8] sm:$0xff] }
0x134f   :  { %801 = vmatpush.msrb.mxu3 %v734_v2 }
0x1350   :  { %v583_v5 = vadd.s32 %v582_v3, %v580_v4  ;;  %v699_v3 = vld [vmem:[#allocation8 + $0xc0] sm:$0xff] }
0x1351   :  { %v731_v4 = vld [vmem:[#allocation8 + $0x1c0] sm:$0xff]  ;;  %742 = vmatpush.msrb.mxu0 %v699_v3 }
0x1352   :  { %vm584_vm12 = vcmp.eq.s32.totalorder %v1078_v17, %v583_v5  ;;  %vm585_vm13 = vcmp.eq.s32.totalorder %v1081_v18, %v583_v5  ;;  %v700_v5 = vld [vmem:[#allocation8 + $0xc8] sm:$0xff]  ;;  %762 = vmatpush.msrb.mxu1 %v731_v4 }
0x1353   :  { %v586_v6 = vsel %vm584_vm12, -inf, %v559_v52  ;;  %v587_v7 = vsel %vm585_vm13, -inf, %v560_v53  ;;  %782 = vmatpush.msrb.mxu2 %v700_v5 }
0x1354   :  { %v588_v8 = vmax.f32 %v586_v6, %v587_v7 }
0x1356   :  { %589 = vmax.xlane.f32.xlu0 %v588_v8  ;;  %v729_v8 = vld [vmem:[#allocation8 + $0x1b0] sm:$0xff] }
0x1357   :  { %763 = vmatpush.msrb.mxu1 %v729_v8 }
0x13c9   :  { %v590_v9 = vpop.xlane.xlu0 %589 }
0x13ca   :  { %vm591_vm14 = vcmp.eq.f32.partialorder %v586_v6, %v590_v9  ;;  %vm592_vm15 = vcmp.eq.f32.partialorder %v587_v7, %v590_v9  ;;  %v698_v9 = vld [vmem:[#allocation8 + $0xb8] sm:$0xff] }
0x13cb   :  { %v593_v10 = vsel %vm591_vm14, %v1078_v17, 256  ;;  %v594_v11 = vsel %vm592_vm15, %v1081_v18, 256  ;;  %783 = vmatpush.msrb.mxu2 %v698_v9 }
0x13cc   :  { %vm595_vm0 = vcmp.lt.s32.totalorder %v593_v10, %v594_v11 }
0x13cd   :  { %v596_v13 = vsel %vm595_vm0, %v593_v10, %v594_v11  ;;  %v730_v10 = vld [vmem:[#allocation8 + $0x1b8] sm:$0xff]  ;;  %v695_v11 = vld [vmem:[#allocation8 + $0xa0] sm:$0xff] }
0x13ce   :  { %v598_v15 = vshra.s32 %v596_v13, 16  ;;  %v597_v19 = vand.u32 65535, %v596_v13  ;;  %v727_v13 = vld [vmem:[#allocation8 + $0x1a0] sm:$0xff] }
0x13cf   :  { %764 = vmatpush.msrb.mxu1 %v727_v13 }
0x13d0   :  { %v600_v16 = vcvt.s32.f32 %v598_v15  ;;  %v599_v21 = vcvt.s32.f32 %v597_v19  ;;  %v696_v15 = vld [vmem:[#allocation8 + $0xa8] sm:$0xff]  ;;  %v693_v19 = vld [vmem:[#allocation8 + $0x90] sm:$0xff] }
0x13d1   :  { %784 = vmatpush.msrb.mxu2 %v696_v15 }
0x13d2   :  { %601 = vmin.xlane.f32.xlu1 %v600_v16 }
0x1445   :  { %v602_v20 = vpop.xlane.xlu1 %601 }
0x1446   :  { %vm603_vm1 = vcmp.eq.f32.partialorder %v600_v16, %v602_v20  ;;  %v608_v23 = vcvt.f32.s32 %v602_v20  ;;  %v728_v16 = vld [vmem:[#allocation8 + $0x1a8] sm:$0xff]  ;;  %v725_v20 = vld [vmem:[#allocation8 + $0x190] sm:$0xff] }
0x1447   :  { %v604_v22 = vsel %vm603_vm1, %v599_v21, inf  ;;  %v694_v21 = vld [vmem:[#allocation8 + $0x98] sm:$0xff]  ;;  %765 = vmatpush.msrb.mxu1 %v725_v20 }
0x1448   :  { %605 = vmin.xlane.f32.xlu2 %v604_v22  ;;  %v609_v25 = vshll.u32 %v608_v23, 16  ;;  %v726_v22 = vld [vmem:[#allocation8 + $0x198] sm:$0xff]  ;;  %v691_v23 = vld [vmem:[#allocation8 + $0x80] sm:$0xff]  ;;  %785 = vmatpush.msrb.mxu2 %v694_v21 }
0x14bb   :  { %v606_v24 = vpop.xlane.xlu2 %605 }
0x14bc   :  { %v607_v26 = vcvt.f32.s32 %v606_v24  ;;  %v723_v24 = vld [vmem:[#allocation8 + $0x180] sm:$0xff] }
0x14bd   :  { %766 = vmatpush.msrb.mxu1 %v723_v24 }
0x14be   :  { %v610_v27 = vadd.s32 %v609_v25, %v607_v26  ;;  %v692_v25 = vld [vmem:[#allocation8 + $0x88] sm:$0xff] }
0x14bf   :  { %v724_v26 = vld [vmem:[#allocation8 + $0x188] sm:$0xff]  ;;  %786 = vmatpush.msrb.mxu2 %v692_v25 }
0x14c0   :  { %vm611_vm2 = vcmp.eq.s32.totalorder %v1078_v17, %v610_v27  ;;  %vm612_vm3 = vcmp.eq.s32.totalorder %v1081_v18, %v610_v27  ;;  %v689_v27 = vld [vmem:[#allocation8 + $0x70] sm:$0xff] }
0x14c1   :  { %v613_v28 = vsel %vm611_vm2, -inf, %v586_v6  ;;  %v614_v29 = vsel %vm612_vm3, -inf, %v587_v7  ;;  %v732_v6 = vld [vmem:[#allocation8 + $0x1c8] sm:$0xff]  ;;  %v697_v7 = vld [vmem:[#allocation8 + $0xb0] sm:$0xff] }
0x14c2   :  { %v615_v30 = vmax.f32 %v613_v28, %v614_v29  ;;  %802 = vmatpush.msrb.mxu3 %v732_v6  ;;  %743 = vmatpush.msrb.mxu0 %v697_v7 }
0x14c4   :  { %616 = vmax.xlane.f32.xlu0 %v615_v30  ;;  %803 = vmatpush.msrb.mxu3 %v730_v10  ;;  %v722_v30 = vld [vmem:[#allocation8 + $0x178] sm:$0xff] }
0x14c5   :  { %744 = vmatpush.msrb.mxu0 %v695_v11 }
0x14c6   :  { %804 = vmatpush.msrb.mxu3 %v728_v16 }
0x14c7   :  { %745 = vmatpush.msrb.mxu0 %v693_v19 }
0x14c8   :  { %805 = vmatpush.msrb.mxu3 %v726_v22 }
0x14c9   :  { %746 = vmatpush.msrb.mxu0 %v691_v23 }
0x14ca   :  { %806 = vmatpush.msrb.mxu3 %v724_v26 }
0x14cb   :  { %747 = vmatpush.msrb.mxu0 %v689_v27 }
0x14cc   :  { %807 = vmatpush.msrb.mxu3 %v722_v30 }
0x1537   :  { %v617_v31 = vpop.xlane.xlu0 %616 }
0x1538   :  { %vm618_vm4 = vcmp.eq.f32.partialorder %v613_v28, %v617_v31  ;;  %vm619_vm5 = vcmp.eq.f32.partialorder %v614_v29, %v617_v31  ;;  %v687_v31 = vld [vmem:[#allocation8 + $0x60] sm:$0xff] }
0x1539   :  { %v620_v32 = vsel %vm618_vm4, %v1078_v17, 256  ;;  %v621_v33 = vsel %vm619_vm5, %v1081_v18, 256  ;;  %748 = vmatpush.msrb.mxu0 %v687_v31 }
0x153a   :  { %vm622_vm6 = vcmp.lt.s32.totalorder %v620_v32, %v621_v33 }
0x153b   :  { %v623_v34 = vsel %vm622_vm6, %v620_v32, %v621_v33  ;;  %v719_v32 = vld [vmem:[#allocation8 + $0x160] sm:$0xff]  ;;  %v688_v33 = vld [vmem:[#allocation8 + $0x68] sm:$0xff] }
0x153c   :  { %v625_v35 = vshra.s32 %v623_v34, 16  ;;  %v624_v37 = vand.u32 65535, %v623_v34  ;;  %v720_v34 = vld [vmem:[#allocation8 + $0x168] sm:$0xff] }
0x153d   :  { %808 = vmatpush.msrb.mxu3 %v720_v34 }
0x153e   :  { %v627_v36 = vcvt.s32.f32 %v625_v35  ;;  %v626_v39 = vcvt.s32.f32 %v624_v37  ;;  %v685_v35 = vld [vmem:[#allocation8 + $0x50] sm:$0xff]  ;;  %v686_v37 = vld [vmem:[#allocation8 + $0x58] sm:$0xff] }
0x153f   :  { %749 = vmatpush.msrb.mxu0 %v685_v35 }
0x1540   :  { %628 = vmin.xlane.f32.xlu1 %v627_v36 }
0x15b3   :  { %v629_v38 = vpop.xlane.xlu1 %628 }
0x15b4   :  { %vm630_vm7 = vcmp.eq.f32.partialorder %v627_v36, %v629_v38  ;;  %v635_v41 = vcvt.f32.s32 %v629_v38  ;;  %v717_v36 = vld [vmem:[#allocation8 + $0x150] sm:$0xff]  ;;  %v718_v38 = vld [vmem:[#allocation8 + $0x158] sm:$0xff] }
0x15b5   :  { %v631_v40 = vsel %vm630_vm7, %v626_v39, inf  ;;  %v683_v39 = vld [vmem:[#allocation8 + $0x40] sm:$0xff]  ;;  %809 = vmatpush.msrb.mxu3 %v718_v38 }
0x15b6   :  { %632 = vmin.xlane.f32.xlu2 %v631_v40  ;;  %v636_v43 = vshll.u32 %v635_v41, 16  ;;  %v715_v40 = vld [vmem:[#allocation8 + $0x140] sm:$0xff]  ;;  %v684_v41 = vld [vmem:[#allocation8 + $0x48] sm:$0xff]  ;;  %750 = vmatpush.msrb.mxu0 %v683_v39 }
0x1629   :  { %v633_v42 = vpop.xlane.xlu2 %632 }
0x162a   :  { %v634_v44 = vcvt.f32.s32 %v633_v42  ;;  %v716_v42 = vld [vmem:[#allocation8 + $0x148] sm:$0xff] }
0x162b   :  { %810 = vmatpush.msrb.mxu3 %v716_v42 }
0x162c   :  { %v637_v45 = vadd.s32 %v636_v43, %v634_v44 }
0x162e   :  { %vm638_vm8 = vcmp.eq.s32.totalorder %v1078_v17, %v637_v45  ;;  %vm639_vm9 = vcmp.eq.s32.totalorder %v1081_v18, %v637_v45 }
0x162f   :  { %v1147_v46 = vsel %vm638_vm8, -inf, %v613_v28  ;;  %v1149_v47 = vsel %vm639_vm9, -inf, %v614_v29  ;;  %v721_v28 = vld [vmem:[#allocation8 + $0x170] sm:$0xff]  ;;  %v690_v29 = vld [vmem:[#allocation8 + $0x78] sm:$0xff] }
0x1630   :  { %v642_v48 = vmax.f32 %v1147_v46, %v1149_v47  ;;  %767 = vmatpush.msrb.mxu1 %v721_v28  ;;  %787 = vmatpush.msrb.mxu2 %v690_v29 }
0x1632   :  { %643 = vmax.xlane.f32.xlu0 %v642_v48  ;;  %768 = vmatpush.msrb.mxu1 %v719_v32 }
0x1633   :  { %788 = vmatpush.msrb.mxu2 %v688_v33 }
0x1634   :  { %769 = vmatpush.msrb.mxu1 %v717_v36 }
0x1635   :  { %789 = vmatpush.msrb.mxu2 %v686_v37 }
0x1636   :  { %770 = vmatpush.msrb.mxu1 %v715_v40 }
0x1637   :  { %790 = vmatpush.msrb.mxu2 %v684_v41 }
0x16a5   :  { %v644_v49 = vpop.xlane.xlu0 %643 }
0x16a6   :  { %vm645_vm10 = vcmp.eq.f32.partialorder %v1147_v46, %v644_v49  ;;  %vm646_vm11 = vcmp.eq.f32.partialorder %v1149_v47, %v644_v49  ;;  %v681_v49 = vld [vmem:[#allocation8 + $0x30] sm:$0xff] }
0x16a7   :  { %v647_v50 = vsel %vm645_vm10, %v1078_v17, 256  ;;  %v648_v51 = vsel %vm646_vm11, %v1081_v18, 256  ;;  %751 = vmatpush.msrb.mxu0 %v681_v49 }
0x16a8   :  { %vm649_vm12 = vcmp.lt.s32.totalorder %v647_v50, %v648_v51 }
0x16a9   :  { %v1157_v52 = vsel %vm649_vm12, %v647_v50, %v648_v51  ;;  %v713_v50 = vld [vmem:[#allocation8 + $0x130] sm:$0xff]  ;;  %v682_v51 = vld [vmem:[#allocation8 + $0x38] sm:$0xff]  ;;  %752 = vmatpush.msrb.mxu0 %v679_v55 }
0x16aa   :  { %v652_v53 = vshra.s32 %v1157_v52, 16  ;;  %v651_v43 = vand.u32 65535, %v1157_v52  ;;  %771 = vmatpush.msrb.mxu1 %v713_v50  ;;  %791 = vmatpush.msrb.mxu2 %v682_v51  ;;  %v712_v52 = vld [vmem:[#allocation8 + $0x128] sm:$0xff] }
0x16ab   :  { %753 = vmatpush.msrb.mxu0 %v677_v58 }
0x16ac   :  { %v1160_v54 = vcvt.s32.f32 %v652_v53  ;;  %v653_v45 = vcvt.s32.f32 %v651_v43  ;;  %v714_v53 = vld [vmem:[#allocation8 + $0x138] sm:$0xff]  ;;  %772 = vmatpush.msrb.mxu1 %v711_v56  ;;  %792 = vmatpush.msrb.mxu2 %v680_v57 }
0x16ad   :  { %811 = vmatpush.msrb.mxu3 %v714_v53  ;;  %754 = vmatpush.msrb.mxu0 %v675_v61 }
0x16ae   :  { %655 = vmin.xlane.f32.xlu1 %v1160_v54  ;;  %793 = vmatpush.msrb.mxu2 %v678_v59 }
0x16af   :  { %812 = vmatpush.msrb.mxu3 %v712_v52 }
0x16b0   :  { %794 = vmatpush.msrb.mxu2 %v676_v63 }
0x16b1   :  { %813 = vmatpush.msrb.mxu3 %v710_v60 }
0x16b3   :  { %814 = vmatpush.msrb.mxu3 %v708_v0 }
0x1721   :  { %v656_v44 = vpop.xlane.xlu1 %655 }
0x1722   :  { %vm657_vm13 = vcmp.eq.f32.partialorder %v1160_v54, %v656_v44  ;;  %v709_v54 = vld [vmem:[#allocation8 + $0x110] sm:$0xff]  ;;  %v662_v1 = vcvt.f32.s32 %v656_v44 }
0x1723   :  { %v658_v48 = vsel %vm657_vm13, %v653_v45, inf  ;;  %773 = vmatpush.msrb.mxu1 %v709_v54 }
0x1724   :  { %659 = vmin.xlane.f32.xlu2 %v658_v48  ;;  %v663_v3 = vshll.u32 %v662_v1, 16 }
0x1725   :  { %774 = vmatpush.msrb.mxu1 %v707_v62 }
0x1797   :  { %v660_v2 = vpop.xlane.xlu2 %659 }
0x1798   :  { %v661_v4 = vcvt.f32.s32 %v660_v2 }
0x179a   :  { %v664_v5 = vadd.s32 %v663_v3, %v661_v4 }
0x179c   :  { %vm665_vm14 = vcmp.eq.s32.totalorder %v1078_v17, %v664_v5  ;;  %vm666_vm15 = vcmp.eq.s32.totalorder %v1081_v18, %v664_v5 }
0x179d   :  { %v667_v6 = vsel %vm665_vm14, -inf, %v1147_v46  ;;  %v668_v7 = vsel %vm666_vm15, -inf, %v1149_v47 }
0x179e   :  { %vm669_vm0 = vcmp.lt.f32.partialorder %v667_v6, 0.0  ;;  %vm670_vm1 = vcmp.lt.f32.partialorder %v668_v7, 0.0 }
0x179f   :  { %v671_v8 = vsel %vm669_vm0, %v1072_v12, 0.0  ;;  %856 = vmatmul.msk.f32.vlgmr.msrb.gmra.mxu0 %vm669_vm0, %v1072_v12  ;;  %v672_v9 = vsel %vm670_vm1, %v1074_v14, 0.0  ;;  %857 = vmatmul.msk.f32.vlgmr.msrb.gmra.mxu1 %vm670_vm1, %v1074_v14 }
0x17a0   :  { %673 = vst [vmem:[#allocation10] sm:$0xff] %v671_v8  ;;  %858 = vmatmul.msk.f32.vlgmr.msrb.gmra.mxu2 %vm669_vm0, %v1072_v12  ;;  %859 = vmatmul.msk.f32.vlgmr.msrb.gmra.mxu3 %vm670_vm1, %v1074_v14 }
0x17a1   :  { %674 = vst [vmem:[#allocation10 + $0x8] sm:$0xff] %v672_v9 }
0x17a2   :  { %831 = dma.vmem_to_hbm [thread:$0]  %s827_s3, 256, %s829_s15, [#allocation4]  }
0x181c   :  { %v756_v17 = vpop.f32.mrf.mxu0  ;;  %v776_v18 = vpop.f32.mrf.mxu1 }
0x181d   :  { %v777_v46 = vadd.f32 %v776_v18, %v756_v17 }
0x181f   :  { %819 = vst [vmem:[#allocation11] sm:$0xff] %v777_v46 }
0x1823   :  { %v796_v12 = vpop.f32.mrf.mxu2  ;;  %v816_v14 = vpop.f32.mrf.mxu3 }
0x1824   :  { %v817_v47 = vadd.f32 %v816_v14, %v796_v12 }
0x1826   :  { %820 = vst [vmem:[#allocation11 + $0x8] sm:$0xff] %v817_v47 }
0x1827   :  { %842 = dma.vmem_to_hbm [thread:$0]  %s838_s17, 256, %s840_s20, [#allocation12]  }
0x1828   :  { %1018 = dma.done.wait [#allocation4], 256  }
0x1829   :  { %1019 = vsyncadd [#allocation4], 4294967040 }
0x182a   :  { %1020 = dma.done.wait [#allocation12], 256  }
0x182b   :  { %1021 = vsyncadd [#allocation12], 4294967040 }
0x182c   :  { %851 = vsyncpa [#allocation3], 1 }
0x182d   :  { %852 = vsyncpa [#allocation6], 1 }
0x182e   :  { %853 = vsyncpa [#allocation9], 1 }
0x182f   :  { %854 = vsyncpa [#allocation4], 1 }
0x1830   :  { %855 = vsyncpa [#allocation12], 1 }

</bundles_post_ra>
